<compile_context>
chip_gen: v7x
topology: tpu7x:2x2x1
jax: 0.10.0
libtpu: 0.0.40
codegen_flags: <defaults>
</compile_context>

<pallas_src>
import functools
import math

import jax
import jax.numpy as jnp
from jax.experimental import pallas as pl
from jax.experimental.pallas import tpu as pltpu


# ---------------------------------------------------------------------------
# In-kernel helpers (f32 elementwise math, matching PyTorch defaults).
# ---------------------------------------------------------------------------
def _layernorm(x, gamma, beta, eps=1e-5):
    mean = jnp.mean(x, axis=-1, keepdims=True)
    var = jnp.mean((x - mean) ** 2, axis=-1, keepdims=True)
    return (x - mean) * jax.lax.rsqrt(var + eps) * gamma + beta


def _gelu_exact(x):
    # PyTorch nn.GELU default: exact erf-based GELU.
    return 0.5 * x * (1.0 + jax.lax.erf(x * (1.0 / math.sqrt(2.0))))


# ---------------------------------------------------------------------------
# Pallas kernel: one post-norm transformer block for one (batch, q-tile) cell.
# ---------------------------------------------------------------------------
def transformer_block_kernel(
    xq_ref,              # [1, tq, D] query / residual rows of this grid cell
    xf_ref,              # [1, N,  D] full sequence (K/V source)
    wq_ref, bq_ref,      # [D, D] bf16 (1/sqrt(dh) folded in), [1, D] f32
    wkv_ref, bkv_ref,    # [D, 2D] bf16 (Wk | Wv fused),       [1, 2D] f32
    wo_ref, bo_ref,      # [D, D] bf16, [1, D] f32
    ln1_g_ref, ln1_b_ref,
    w1_ref, b1_ref,      # [D, H] bf16, [1, H] f32
    w2_ref, b2_ref,      # [H, D] bf16, [1, D] f32
    ln2_g_ref, ln2_b_ref,
    o_ref,               # [1, tq, D]
    *, heads,
):
    f32 = jnp.float32
    bf16 = jnp.bfloat16

    xq = xq_ref[0].astype(f32)            # [tq, D] residual / LN path stays f32
    tq, d = xq.shape
    dh = d // heads

    xq16 = xq.astype(bf16)
    xf16 = xf_ref[0].astype(bf16)         # [N, D]

    # --- lane-dense projections (bf16 MXU, f32 accumulation) ------------------
    # Q from the query tile; K and V in ONE fused [N, D] x [D, 2D] matmul.
    # The 1/sqrt(dh) scale is already folded into wq / bq (one-time prep).
    q = jnp.dot(xq16, wq_ref[...], preferred_element_type=f32) + bq_ref[...]     # [tq, D]
    kv = jnp.dot(xf16, wkv_ref[...], preferred_element_type=f32) + bkv_ref[...]  # [N, 2D]

    # --- multi-head attention --------------------------------------------------
    # Score / context matmuls are inherently per-head (contraction dim = dh), so
    # an unrolled static loop issues the same MXU work as a head-batched einsum
    # while avoiding in-kernel reshapes/transposes of activations.
    ctx_parts = []
    for h in range(heads):
        qh = q[:, h * dh:(h + 1) * dh].astype(bf16)                # [tq, dh]
        kh = kv[:, h * dh:(h + 1) * dh].astype(bf16)               # [N,  dh]
        vh = kv[:, d + h * dh: d + (h + 1) * dh].astype(bf16)      # [N,  dh]

        s = jnp.einsum("qd,kd->qk", qh, kh,
                       preferred_element_type=f32)                 # [tq, N]
        s = s - jnp.max(s, axis=-1, keepdims=True)
        p = jnp.exp(s)
        # NOTE: approx reciprocal (~1e-3 rel. err) is fine for inference; use an
        # exact divide when running tight parity tests against PyTorch.
        p = p * pl.reciprocal(jnp.sum(p, axis=-1, keepdims=True), approx=True)
        ctx_parts.append(jnp.dot(p.astype(bf16), vh,
                                 preferred_element_type=f32))      # [tq, dh]

    # concat(ctx_h) @ Wo as ONE lane-dense [tq, D] x [D, D] matmul (K-dim = D);
    # no [H, tq, D] intermediate and no head-sum reduction.
    ctx = jnp.concatenate(ctx_parts, axis=-1).astype(bf16)          # [tq, D]
    attn_out = jnp.dot(ctx, wo_ref[...], preferred_element_type=f32) + bo_ref[...]

    # --- post-norm residual 1 (f32) --------------------------------------------
    y = _layernorm(xq + attn_out, ln1_g_ref[...], ln1_b_ref[...])

    # --- MLP: bf16 MXU matmuls, f32 GELU / bias / residual ----------------------
    h1 = jnp.dot(y.astype(bf16), w1_ref[...], preferred_element_type=f32) + b1_ref[...]
    h1 = _gelu_exact(h1)
    mlp_out = jnp.dot(h1.astype(bf16), w2_ref[...], preferred_element_type=f32) + b2_ref[...]

    # --- post-norm residual 2 (f32) --------------------------------------------
    out = _layernorm(y + mlp_out, ln2_g_ref[...], ln2_b_ref[...])
    o_ref[0] = out.astype(o_ref.dtype)


# ---------------------------------------------------------------------------
# Wrapper helpers.
# ---------------------------------------------------------------------------
def _pick_tq(n):
    """Query-row tile: enough grid steps for pipelining / megacore sharding,
    while keeping tq a divisor of N (blocks must tile the array exactly)."""
    for t in (256, 128):
        if n % t == 0 and n // t >= 2:
            return t
    return n


def _vmem_capacity_bytes():
    try:
        info = pltpu.get_tpu_info()
        cap = getattr(info, "vmem_capacity_bytes", None)
        if cap:
            return int(cap)
    except Exception:
        pass
    return 128 << 20  # conservative default (v5e/v6e class)


def _vmem_limit_bytes(n, tq, d, hdim, heads):
    """Advisory scoped-VMEM budget from the working set, capped at 3/4 of the
    physical VMEM of the current generation (≈48 MiB on v7x, ≈96 MiB on
    v5e/v6e) instead of a hard-coded v7x-safe ceiling."""
    del heads  # per-head temporaries are tiny relative to the slabs below
    cap = (_vmem_capacity_bytes() * 3) // 4
    w = 2 * (4 * d * d + 2 * d * hdim)                                  # bf16 weights
    p = 4 * (8 * d + hdim)                                              # f32 biases / LN
    acts = 4 * (6 * tq * d + 3 * n * d + 4 * tq * n + 2 * tq * hdim) \
        + 2 * (tq * d + n * d + tq * hdim)                              # bf16 copies
    io = 4 * 2 * (2 * tq * d + n * d)                                   # double-buffered blocks
    total = 2 * w + p + acts + io + (4 << 20)
    return int(min(max(total, 16 << 20), cap))


_WEIGHTS_SINGLE_BUFFER = None


def _weights_single_buffer():
    """Decide ONCE (tiny probe compile at first use, outside any traced path)
    whether this jax build honors pipeline_mode=pl.Buffered(1) on the top-level
    pallas_call pipeline, so constant-index weight blocks stay single-buffered
    in VMEM (matters most on v7x's 64 MiB)."""
    global _WEIGHTS_SINGLE_BUFFER
    if _WEIGHTS_SINGLE_BUFFER is not None:
        return _WEIGHTS_SINGLE_BUFFER

    def _probe_kernel(x_ref, w_ref, o_ref):
        o_ref[...] = x_ref[...] + w_ref[...]

    try:
        x = jnp.zeros((2, 8, 128), jnp.float32)
        w = jnp.zeros((8, 128), jnp.float32)
        fn = pl.pallas_call(
            _probe_kernel,
            out_shape=jax.ShapeDtypeStruct((2, 8, 128), jnp.float32),
            grid=(2,),
            in_specs=[
                pl.BlockSpec((1, 8, 128), lambda b: (b, 0, 0)),
                pl.BlockSpec((8, 128), lambda b: (0, 0),
                             pipeline_mode=pl.Buffered(1)),
            ],
            out_specs=pl.BlockSpec((1, 8, 128), lambda b: (b, 0, 0)),
        )
        jax.block_until_ready(fn(x, w))
        _WEIGHTS_SINGLE_BUFFER = True
    except Exception:
        _WEIGHTS_SINGLE_BUFFER = False
    return _WEIGHTS_SINGLE_BUFFER


def prep_layer_params(raw, heads):
    """One-time per-layer parameter prep (call at init, NOT per forward):
      * fold 1/sqrt(dh) into Wq / bq,
      * fuse Wk|Wv into one lane-dense [D, 2D] operand.
    Weight convention: [in, out] (out = x @ W + b).  Transpose first if
    importing PyTorch nn.Linear weights ([out, in])."""
    d = raw["wq"].shape[0]
    assert d % heads == 0, "embed_dim must be divisible by num_heads"
    scale = 1.0 / math.sqrt(d // heads)
    wq_s = (raw["wq"].astype(jnp.float32) * scale).astype(raw["wq"].dtype)
    bq_s = (raw["bq"].astype(jnp.float32) * scale)
    wkv = jnp.concatenate([raw["wk"], raw["wv"]], axis=1)
    bkv = jnp.concatenate([raw["bk"], raw["bv"]], axis=1).astype(jnp.float32)
    return (
        wq_s, bq_s, wkv, bkv, raw["wo"], raw["bo"],
        raw["ln1_g"], raw["ln1_b"],
        raw["w1"], raw["b1"], raw["w2"], raw["b2"],
        raw["ln2_g"], raw["ln2_b"],
    )


def transformer_block(x, prepped, *, heads):
    B, N, D = x.shape
    assert D % heads == 0, "embed_dim must be divisible by num_heads"
    tq = _pick_tq(N)
    hdim = prepped[8].shape[1]  # w1: [D, H]
    vmem_limit = _vmem_limit_bytes(N, tq, D, hdim, heads)
    single = _weights_single_buffer()

    def const_spec(shape):
        ndim = len(shape)
        index_map = (lambda b, i, _nd=ndim: (0,) * _nd)
        if single:
            # Constant block index across the whole grid -> single-buffer the
            # weights so they are not allocated twice in VMEM.
            return pl.BlockSpec(shape, index_map, pipeline_mode=pl.Buffered(1))
        return pl.BlockSpec(shape, index_map)

    in_specs = [
        pl.BlockSpec((1, tq, D), lambda b, i: (b, i, 0)),   # query / residual rows
        pl.BlockSpec((1, N, D), lambda b, i: (b, 0, 0)),    # full sequence for K/V
    ] + [const_spec(tuple(p.shape)) for p in prepped]

    # NOTE: no input_output_aliases -- every q-tile step reads the full-sequence
    # K/V view of x, so aliasing x to the output would race once N//tq > 1.
    return pl.pallas_call(
        functools.partial(transformer_block_kernel, heads=heads),
        out_shape=jax.ShapeDtypeStruct((B, N, D), x.dtype),
        grid=(B, N // tq),
        in_specs=in_specs,
        out_specs=pl.BlockSpec((1, tq, D), lambda b, i: (b, i, 0)),
        compiler_params=pltpu.CompilerParams(
            dimension_semantics=("parallel", "parallel"),
            vmem_limit_bytes=vmem_limit,
        ),
    )(x, x, *prepped)


def transformer_encoder(x, seq, prepped_layers, *, heads, mask=None):
    # TODO(synk): attention-mask path not implemented (forward default mask=None).
    del mask
    for prepped in prepped_layers:
        x = transformer_block(x, prepped, heads=heads)
        # TODO(synk): `seq` update rule unknown (TransformerBlock source missing);
        # it is passed through unchanged.
    return x, seq


# ---------------------------------------------------------------------------
# Deterministic parameter init (bf16 weights, f32 biases / LayerNorm params).
# ---------------------------------------------------------------------------
def init_block_params(key, embed_dim, dim_linear_block, weight_dtype=jnp.bfloat16):
    ks = jax.random.split(key, 12)
    s = 0.05
    D, H = embed_dim, dim_linear_block

    def w(k, shape):
        return (s * jax.random.normal(k, shape, jnp.float32)).astype(weight_dtype)

    def b(k, shape):
        return 0.01 * jax.random.normal(k, shape, jnp.float32)

    return {
        "wq": w(ks[0], (D, D)), "bq": b(ks[6], (1, D)),
        "wk": w(ks[1], (D, D)), "bk": b(ks[7], (1, D)),
        "wv": w(ks[2], (D, D)), "bv": b(ks[8], (1, D)),
        "wo": w(ks[3], (D, D)), "bo": b(ks[9], (1, D)),
        "ln1_g": jnp.ones((1, D), jnp.float32), "ln1_b": jnp.zeros((1, D), jnp.float32),
        "w1": w(ks[4], (D, H)), "b1": b(ks[10], (1, H)),
        "w2": w(ks[5], (H, D)), "b2": b(ks[11], (1, D)),
        "ln2_g": jnp.ones((1, D), jnp.float32), "ln2_b": jnp.zeros((1, D), jnp.float32),
    }


if __name__ == "__main__":
    # Small shapes consistent with the module's forward.
    embed_dim = 32
    num_heads = 4
    num_layers = 2
    dim_linear_block = 64
    B, N = 2, 8

    root = jax.random.PRNGKey(0)
    kx, kseq, kp = jax.random.split(root, 3)
    x = jax.random.normal(kx, (B, N, embed_dim), jnp.float32)
    seq = jax.random.normal(kseq, (B, N, embed_dim), jnp.float32)

    layer_keys = jax.random.split(kp, num_layers)
    raw_layers = [init_block_params(k, embed_dim, dim_linear_block) for k in layer_keys]
    # One-time prep (fused Wk|Wv, scale folded into Wq/bq) -- never per call.
    prepped_layers = [prep_layer_params(p, num_heads) for p in raw_layers]

    out_x, out_seq = transformer_encoder(x, seq, prepped_layers, heads=num_heads, mask=None)
    out_x = jax.block_until_ready(out_x)
    out_seq = jax.block_until_ready(out_seq)

    assert out_x.shape == (B, N, embed_dim)
    assert out_seq.shape == (B, N, embed_dim)
    assert bool(jnp.all(jnp.isfinite(out_x)))
    print("KERNEL_OK")
</pallas_src>

<mosaic_0001>
module attributes {stable_mosaic.version = 11 : i64} {
  func.func @_probe_kernel(%arg0: i32, %arg1: memref<1x8x128xf32, #tpu.memory_space<vmem>>, %arg2: memref<8x128xf32, #tpu.memory_space<vmem>>, %arg3: memref<1x8x128xf32, #tpu.memory_space<vmem>>) attributes {dimension_semantics = [#tpu.dimension_semantics<arbitrary>], iteration_bounds = array<i64: 2>, scalar_prefetch = 0 : i64, scratch_operands = 0 : i64, tpu.core_type = #tpu.core_type<tc>, window_params = [{transform_indices = @transform_0, window_bounds = array<i64: 1, 8, 128>}, {pipeline_mode = #tpu.pipeline_mode<synchronous>, transform_indices = @transform_1, window_bounds = array<i64: 8, 128>}, {transform_indices = @transform_2, window_bounds = array<i64: 1, 8, 128>}]} {
    %c0 = arith.constant 0 : index
    %c0_0 = arith.constant 0 : index
    %c0_1 = arith.constant 0 : index
    %0 = vector.load %arg1[%c0, %c0_0, %c0_1] : memref<1x8x128xf32, #tpu.memory_space<vmem>>, vector<1x8x128xf32>
    %c0_2 = arith.constant 0 : index
    %c0_3 = arith.constant 0 : index
    %1 = vector.load %arg2[%c0_2, %c0_3] : memref<8x128xf32, #tpu.memory_space<vmem>>, vector<8x128xf32>
    %2 = vector.shape_cast %1 : vector<8x128xf32> to vector<1x8x128xf32>
    %3 = arith.addf %0, %2 : vector<1x8x128xf32>
    %c0_4 = arith.constant 0 : index
    %c0_5 = arith.constant 0 : index
    %c0_6 = arith.constant 0 : index
    %4 = vector.load %arg3[%c0_4, %c0_5, %c0_6] : memref<1x8x128xf32, #tpu.memory_space<vmem>>, vector<1x8x128xf32>
    tpu.vector_store %arg3[%c0_4, %c0_5, %c0_6], %3 {strides = array<i32>} : memref<1x8x128xf32, #tpu.memory_space<vmem>>, vector<1x8x128xf32>,
    return
  }
  func.func @transform_0(%arg0: i32) -> (i32, i32, i32) {
    %c0_i32 = arith.constant 0 : i32
    %c0_i32_0 = arith.constant 0 : i32
    %c0_i32_1 = arith.constant 0 : i32
    return %arg0, %c0_i32, %c0_i32_0 : i32, i32, i32
  }
  func.func @transform_1(%arg0: i32) -> (i32, i32) {
    %c0_i32 = arith.constant 0 : i32
    %c0_i32_0 = arith.constant 0 : i32
    %c0_i32_1 = arith.constant 0 : i32
    return %c0_i32, %c0_i32_0 : i32, i32
  }
  func.func @transform_2(%arg0: i32) -> (i32, i32, i32) {
    %c0_i32 = arith.constant 0 : i32
    %c0_i32_0 = arith.constant 0 : i32
    %c0_i32_1 = arith.constant 0 : i32
    return %arg0, %c0_i32, %c0_i32_0 : i32, i32, i32
  }
}

module attributes {stable_mosaic.version = 11 : i64} {
  func.func @transformer_block_kernel(%arg0: i32, %arg1: i32, %arg2: memref<1x8x32xf32, #tpu.memory_space<vmem>>, %arg3: memref<1x8x32xf32, #tpu.memory_space<vmem>>, %arg4: memref<32x32xbf16, #tpu.memory_space<vmem>>, %arg5: memref<1x32xf32, #tpu.memory_space<vmem>>, %arg6: memref<32x64xbf16, #tpu.memory_space<vmem>>, %arg7: memref<1x64xf32, #tpu.memory_space<vmem>>, %arg8: memref<32x32xbf16, #tpu.memory_space<vmem>>, %arg9: memref<1x32xf32, #tpu.memory_space<vmem>>, %arg10: memref<1x32xf32, #tpu.memory_space<vmem>>, %arg11: memref<1x32xf32, #tpu.memory_space<vmem>>, %arg12: memref<32x64xbf16, #tpu.memory_space<vmem>>, %arg13: memref<1x64xf32, #tpu.memory_space<vmem>>, %arg14: memref<64x32xbf16, #tpu.memory_space<vmem>>, %arg15: memref<1x32xf32, #tpu.memory_space<vmem>>, %arg16: memref<1x32xf32, #tpu.memory_space<vmem>>, %arg17: memref<1x32xf32, #tpu.memory_space<vmem>>, %arg18: memref<1x8x32xf32, #tpu.memory_space<vmem>>) attributes {dimension_semantics = [#tpu.dimension_semantics<parallel>, #tpu.dimension_semantics<parallel>], iteration_bounds = array<i64: 2, 1>, scalar_prefetch = 0 : i64, scratch_operands = 0 : i64, tpu.core_type = #tpu.core_type<tc>, window_params = [{transform_indices = @transform_0, window_bounds = array<i64: 1, 8, 32>}, {transform_indices = @transform_1, window_bounds = array<i64: 1, 8, 32>}, {pipeline_mode = #tpu.pipeline_mode<synchronous>, transform_indices = @transform_2, window_bounds = array<i64: 32, 32>}, {pipeline_mode = #tpu.pipeline_mode<synchronous>, transform_indices = @transform_3, window_bounds = array<i64: 1, 32>}, {pipeline_mode = #tpu.pipeline_mode<synchronous>, transform_indices = @transform_4, window_bounds = array<i64: 32, 64>}, {pipeline_mode = #tpu.pipeline_mode<synchronous>, transform_indices = @transform_5, window_bounds = array<i64: 1, 64>}, {pipeline_mode = #tpu.pipeline_mode<synchronous>, transform_indices = @transform_6, window_bounds = array<i64: 32, 32>}, {pipeline_mode = #tpu.pipeline_mode<synchronous>, transform_indices = @transform_7, window_bounds = array<i64: 1, 32>}, {pipeline_mode = #tpu.pipeline_mode<synchronous>, transform_indices = @transform_8, window_bounds = array<i64: 1, 32>}, {pipeline_mode = #tpu.pipeline_mode<synchronous>, transform_indices = @transform_9, window_bounds = array<i64: 1, 32>}, {pipeline_mode = #tpu.pipeline_mode<synchronous>, transform_indices = @transform_10, window_bounds = array<i64: 32, 64>}, {pipeline_mode = #tpu.pipeline_mode<synchronous>, transform_indices = @transform_11, window_bounds = array<i64: 1, 64>}, {pipeline_mode = #tpu.pipeline_mode<synchronous>, transform_indices = @transform_12, window_bounds = array<i64: 64, 32>}, {pipeline_mode = #tpu.pipeline_mode<synchronous>, transform_indices = @transform_13, window_bounds = array<i64: 1, 32>}, {pipeline_mode = #tpu.pipeline_mode<synchronous>, transform_indices = @transform_14, window_bounds = array<i64: 1, 32>}, {pipeline_mode = #tpu.pipeline_mode<synchronous>, transform_indices = @transform_15, window_bounds = array<i64: 1, 32>}, {transform_indices = @transform_16, window_bounds = array<i64: 1, 8, 32>}]} {
    %c0 = arith.constant 0 : index
    %c0_0 = arith.constant 0 : index
    %c0_1 = arith.constant 0 : index
    %0 = vector.load %arg2[%c0, %c0_0, %c0_1] : memref<1x8x32xf32, #tpu.memory_space<vmem>>, vector<1x8x32xf32>
    %1 = vector.shape_cast %0 : vector<1x8x32xf32> to vector<8x32xf32>
    %2 = arith.truncf %1 : vector<8x32xf32> to vector<8x32xbf16>
    %c0_2 = arith.constant 0 : index
    %c0_3 = arith.constant 0 : index
    %c0_4 = arith.constant 0 : index
    %3 = vector.load %arg3[%c0_2, %c0_3, %c0_4] : memref<1x8x32xf32, #tpu.memory_space<vmem>>, vector<1x8x32xf32>
    %4 = vector.shape_cast %3 : vector<1x8x32xf32> to vector<8x32xf32>
    %5 = arith.truncf %4 : vector<8x32xf32> to vector<8x32xbf16>
    %c0_5 = arith.constant 0 : index
    %c0_6 = arith.constant 0 : index
    %6 = vector.load %arg4[%c0_5, %c0_6] : memref<32x32xbf16, #tpu.memory_space<vmem>>, vector<32x32xbf16>
    %cst = arith.constant dense<0.000000e+00> : vector<8x32xf32>
    %7 = tpu.matmul %2, %6, %cst {dimension_numbers = #tpu.dot_dimension_numbers<[1], [0], [0], [1], [0, 0, 1, 1], [], []>} : vector<8x32xbf16>, vector<32x32xbf16>, vector<8x32xf32> -> vector<8x32xf32>
    %c0_7 = arith.constant 0 : index
    %c0_8 = arith.constant 0 : index
    %8 = vector.load %arg5[%c0_7, %c0_8] : memref<1x32xf32, #tpu.memory_space<vmem>>, vector<1x32xf32>
    %9 = vector.broadcast %8 : vector<1x32xf32> to vector<8x32xf32>
    %10 = arith.addf %7, %9 : vector<8x32xf32>
    %c0_9 = arith.constant 0 : index
    %c0_10 = arith.constant 0 : index
    %11 = vector.load %arg6[%c0_9, %c0_10] : memref<32x64xbf16, #tpu.memory_space<vmem>>, vector<32x64xbf16>
    %cst_11 = arith.constant dense<0.000000e+00> : vector<8x64xf32>
    %12 = tpu.matmul %5, %11, %cst_11 {dimension_numbers = #tpu.dot_dimension_numbers<[1], [0], [0], [1], [0, 0, 1, 1], [], []>} : vector<8x32xbf16>, vector<32x64xbf16>, vector<8x64xf32> -> vector<8x64xf32>
    %c0_12 = arith.constant 0 : index
    %c0_13 = arith.constant 0 : index
    %13 = vector.load %arg7[%c0_12, %c0_13] : memref<1x64xf32, #tpu.memory_space<vmem>>, vector<1x64xf32>
    %14 = vector.broadcast %13 : vector<1x64xf32> to vector<8x64xf32>
    %15 = arith.addf %12, %14 : vector<8x64xf32>
    %16 = vector.extract_strided_slice %10 {offsets = [0, 0], sizes = [8, 8], strides = [1, 1]} : vector<8x32xf32> to vector<8x8xf32>
    %17 = arith.truncf %16 : vector<8x8xf32> to vector<8x8xbf16>
    %18 = vector.extract_strided_slice %15 {offsets = [0, 0], sizes = [8, 8], strides = [1, 1]} : vector<8x64xf32> to vector<8x8xf32>
    %19 = arith.truncf %18 : vector<8x8xf32> to vector<8x8xbf16>
    %20 = vector.extract_strided_slice %15 {offsets = [0, 32], sizes = [8, 8], strides = [1, 1]} : vector<8x64xf32> to vector<8x8xf32>
    %21 = arith.truncf %20 : vector<8x8xf32> to vector<8x8xbf16>
    "tpu.trace_start"() <{level = 10 : i32, message = "qd,kd->qk"}> : () -> ()
    %cst_14 = arith.constant dense<0.000000e+00> : vector<8x8xf32>
    %22 = tpu.matmul %17, %19, %cst_14 {dimension_numbers = #tpu.dot_dimension_numbers<[1], [1], [0], [0], [0, 0, 1, 0], [], []>} : vector<8x8xbf16>, vector<8x8xbf16>, vector<8x8xf32> -> vector<8x8xf32>
    "tpu.trace_stop"() : () -> ()
    %cst_15 = arith.constant dense<0xFF800000> : vector<8xf32>
    %23 = vector.multi_reduction <maximumf>, %22, %cst_15 [1] : vector<8x8xf32> to vector<8xf32>
    %24 = vector.shape_cast %23 : vector<8xf32> to vector<8x1xf32>
    %25 = vector.broadcast %24 : vector<8x1xf32> to vector<8x8xf32>
    %26 = arith.subf %22, %25 : vector<8x8xf32>
    %27 = math.exp %26 : vector<8x8xf32>
    %cst_16 = arith.constant dense<0.000000e+00> : vector<8xf32>
    %28 = vector.multi_reduction <add>, %27, %cst_16 [1] : vector<8x8xf32> to vector<8xf32>
    %29 = vector.shape_cast %28 : vector<8xf32> to vector<8x1xf32>
    %30 = tpu.reciprocal %29 {approx = true} : vector<8x1xf32> -> vector<8x1xf32>
    %31 = vector.broadcast %30 : vector<8x1xf32> to vector<8x8xf32>
    %32 = arith.mulf %27, %31 : vector<8x8xf32>
    %33 = arith.truncf %32 : vector<8x8xf32> to vector<8x8xbf16>
    %cst_17 = arith.constant dense<0.000000e+00> : vector<8x8xf32>
    %34 = tpu.matmul %33, %21, %cst_17 {dimension_numbers = #tpu.dot_dimension_numbers<[1], [0], [0], [1], [0, 0, 1, 1], [], []>} : vector<8x8xbf16>, vector<8x8xbf16>, vector<8x8xf32> -> vector<8x8xf32>
    %35 = vector.extract_strided_slice %10 {offsets = [0, 8], sizes = [8, 8], strides = [1, 1]} : vector<8x32xf32> to vector<8x8xf32>
    %36 = arith.truncf %35 : vector<8x8xf32> to vector<8x8xbf16>
    %37 = vector.extract_strided_slice %15 {offsets = [0, 8], sizes = [8, 8], strides = [1, 1]} : vector<8x64xf32> to vector<8x8xf32>
    %38 = arith.truncf %37 : vector<8x8xf32> to vector<8x8xbf16>
    %39 = vector.extract_strided_slice %15 {offsets = [0, 40], sizes = [8, 8], strides = [1, 1]} : vector<8x64xf32> to vector<8x8xf32>
    %40 = arith.truncf %39 : vector<8x8xf32> to vector<8x8xbf16>
    "tpu.trace_start"() <{level = 10 : i32, message = "qd,kd->qk"}> : () -> ()
    %cst_18 = arith.constant dense<0.000000e+00> : vector<8x8xf32>
    %41 = tpu.matmul %36, %38, %cst_18 {dimension_numbers = #tpu.dot_dimension_numbers<[1], [1], [0], [0], [0, 0, 1, 0], [], []>} : vector<8x8xbf16>, vector<8x8xbf16>, vector<8x8xf32> -> vector<8x8xf32>
    "tpu.trace_stop"() : () -> ()
    %cst_19 = arith.constant dense<0xFF800000> : vector<8xf32>
    %42 = vector.multi_reduction <maximumf>, %41, %cst_19 [1] : vector<8x8xf32> to vector<8xf32>
    %43 = vector.shape_cast %42 : vector<8xf32> to vector<8x1xf32>
    %44 = vector.broadcast %43 : vector<8x1xf32> to vector<8x8xf32>
    %45 = arith.subf %41, %44 : vector<8x8xf32>
    %46 = math.exp %45 : vector<8x8xf32>
    %cst_20 = arith.constant dense<0.000000e+00> : vector<8xf32>
    %47 = vector.multi_reduction <add>, %46, %cst_20 [1] : vector<8x8xf32> to vector<8xf32>
    %48 = vector.shape_cast %47 : vector<8xf32> to vector<8x1xf32>
    %49 = tpu.reciprocal %48 {approx = true} : vector<8x1xf32> -> vector<8x1xf32>
    %50 = vector.broadcast %49 : vector<8x1xf32> to vector<8x8xf32>
    %51 = arith.mulf %46, %50 : vector<8x8xf32>
    %52 = arith.truncf %51 : vector<8x8xf32> to vector<8x8xbf16>
    %cst_21 = arith.constant dense<0.000000e+00> : vector<8x8xf32>
    %53 = tpu.matmul %52, %40, %cst_21 {dimension_numbers = #tpu.dot_dimension_numbers<[1], [0], [0], [1], [0, 0, 1, 1], [], []>} : vector<8x8xbf16>, vector<8x8xbf16>, vector<8x8xf32> -> vector<8x8xf32>
    %54 = vector.extract_strided_slice %10 {offsets = [0, 16], sizes = [8, 8], strides = [1, 1]} : vector<8x32xf32> to vector<8x8xf32>
    %55 = arith.truncf %54 : vector<8x8xf32> to vector<8x8xbf16>
    %56 = vector.extract_strided_slice %15 {offsets = [0, 16], sizes = [8, 8], strides = [1, 1]} : vector<8x64xf32> to vector<8x8xf32>
    %57 = arith.truncf %56 : vector<8x8xf32> to vector<8x8xbf16>
    %58 = vector.extract_strided_slice %15 {offsets = [0, 48], sizes = [8, 8], strides = [1, 1]} : vector<8x64xf32> to vector<8x8xf32>
    %59 = arith.truncf %58 : vector<8x8xf32> to vector<8x8xbf16>
    "tpu.trace_start"() <{level = 10 : i32, message = "qd,kd->qk"}> : () -> ()
    %cst_22 = arith.constant dense<0.000000e+00> : vector<8x8xf32>
    %60 = tpu.matmul %55, %57, %cst_22 {dimension_numbers = #tpu.dot_dimension_numbers<[1], [1], [0], [0], [0, 0, 1, 0], [], []>} : vector<8x8xbf16>, vector<8x8xbf16>, vector<8x8xf32> -> vector<8x8xf32>
    "tpu.trace_stop"() : () -> ()
    %cst_23 = arith.constant dense<0xFF800000> : vector<8xf32>
    %61 = vector.multi_reduction <maximumf>, %60, %cst_23 [1] : vector<8x8xf32> to vector<8xf32>
    %62 = vector.shape_cast %61 : vector<8xf32> to vector<8x1xf32>
    %63 = vector.broadcast %62 : vector<8x1xf32> to vector<8x8xf32>
    %64 = arith.subf %60, %63 : vector<8x8xf32>
    %65 = math.exp %64 : vector<8x8xf32>
    %cst_24 = arith.constant dense<0.000000e+00> : vector<8xf32>
    %66 = vector.multi_reduction <add>, %65, %cst_24 [1] : vector<8x8xf32> to vector<8xf32>
    %67 = vector.shape_cast %66 : vector<8xf32> to vector<8x1xf32>
    %68 = tpu.reciprocal %67 {approx = true} : vector<8x1xf32> -> vector<8x1xf32>
    %69 = vector.broadcast %68 : vector<8x1xf32> to vector<8x8xf32>
    %70 = arith.mulf %65, %69 : vector<8x8xf32>
    %71 = arith.truncf %70 : vector<8x8xf32> to vector<8x8xbf16>
    %cst_25 = arith.constant dense<0.000000e+00> : vector<8x8xf32>
    %72 = tpu.matmul %71, %59, %cst_25 {dimension_numbers = #tpu.dot_dimension_numbers<[1], [0], [0], [1], [0, 0, 1, 1], [], []>} : vector<8x8xbf16>, vector<8x8xbf16>, vector<8x8xf32> -> vector<8x8xf32>
    %73 = vector.extract_strided_slice %10 {offsets = [0, 24], sizes = [8, 8], strides = [1, 1]} : vector<8x32xf32> to vector<8x8xf32>
    %74 = arith.truncf %73 : vector<8x8xf32> to vector<8x8xbf16>
    %75 = vector.extract_strided_slice %15 {offsets = [0, 24], sizes = [8, 8], strides = [1, 1]} : vector<8x64xf32> to vector<8x8xf32>
    %76 = arith.truncf %75 : vector<8x8xf32> to vector<8x8xbf16>
    %77 = vector.extract_strided_slice %15 {offsets = [0, 56], sizes = [8, 8], strides = [1, 1]} : vector<8x64xf32> to vector<8x8xf32>
    %78 = arith.truncf %77 : vector<8x8xf32> to vector<8x8xbf16>
    "tpu.trace_start"() <{level = 10 : i32, message = "qd,kd->qk"}> : () -> ()
    %cst_26 = arith.constant dense<0.000000e+00> : vector<8x8xf32>
    %79 = tpu.matmul %74, %76, %cst_26 {dimension_numbers = #tpu.dot_dimension_numbers<[1], [1], [0], [0], [0, 0, 1, 0], [], []>} : vector<8x8xbf16>, vector<8x8xbf16>, vector<8x8xf32> -> vector<8x8xf32>
    "tpu.trace_stop"() : () -> ()
    %cst_27 = arith.constant dense<0xFF800000> : vector<8xf32>
    %80 = vector.multi_reduction <maximumf>, %79, %cst_27 [1] : vector<8x8xf32> to vector<8xf32>
    %81 = vector.shape_cast %80 : vector<8xf32> to vector<8x1xf32>
    %82 = vector.broadcast %81 : vector<8x1xf32> to vector<8x8xf32>
    %83 = arith.subf %79, %82 : vector<8x8xf32>
    %84 = math.exp %83 : vector<8x8xf32>
    %cst_28 = arith.constant dense<0.000000e+00> : vector<8xf32>
    %85 = vector.multi_reduction <add>, %84, %cst_28 [1] : vector<8x8xf32> to vector<8xf32>
    %86 = vector.shape_cast %85 : vector<8xf32> to vector<8x1xf32>
    %87 = tpu.reciprocal %86 {approx = true} : vector<8x1xf32> -> vector<8x1xf32>
    %88 = vector.broadcast %87 : vector<8x1xf32> to vector<8x8xf32>
    %89 = arith.mulf %84, %88 : vector<8x8xf32>
    %90 = arith.truncf %89 : vector<8x8xf32> to vector<8x8xbf16>
    %cst_29 = arith.constant dense<0.000000e+00> : vector<8x8xf32>
    %91 = tpu.matmul %90, %78, %cst_29 {dimension_numbers = #tpu.dot_dimension_numbers<[1], [0], [0], [1], [0, 0, 1, 1], [], []>} : vector<8x8xbf16>, vector<8x8xbf16>, vector<8x8xf32> -> vector<8x8xf32>
    %92 = tpu.concatenate %34, %53, %72, %91 in 1 : vector<8x8xf32>, vector<8x8xf32>, vector<8x8xf32>, vector<8x8xf32> -> vector<8x32xf32>
    %93 = arith.truncf %92 : vector<8x32xf32> to vector<8x32xbf16>
    %c0_30 = arith.constant 0 : index
    %c0_31 = arith.constant 0 : index
    %94 = vector.load %arg8[%c0_30, %c0_31] : memref<32x32xbf16, #tpu.memory_space<vmem>>, vector<32x32xbf16>
    %cst_32 = arith.constant dense<0.000000e+00> : vector<8x32xf32>
    %95 = tpu.matmul %93, %94, %cst_32 {dimension_numbers = #tpu.dot_dimension_numbers<[1], [0], [0], [1], [0, 0, 1, 1], [], []>} : vector<8x32xbf16>, vector<32x32xbf16>, vector<8x32xf32> -> vector<8x32xf32>
    %c0_33 = arith.constant 0 : index
    %c0_34 = arith.constant 0 : index
    %96 = vector.load %arg9[%c0_33, %c0_34] : memref<1x32xf32, #tpu.memory_space<vmem>>, vector<1x32xf32>
    %97 = vector.broadcast %96 : vector<1x32xf32> to vector<8x32xf32>
    %98 = arith.addf %95, %97 : vector<8x32xf32>
    %99 = arith.addf %1, %98 : vector<8x32xf32>
    %c0_35 = arith.constant 0 : index
    %c0_36 = arith.constant 0 : index
    %100 = vector.load %arg10[%c0_35, %c0_36] : memref<1x32xf32, #tpu.memory_space<vmem>>, vector<1x32xf32>
    %c0_37 = arith.constant 0 : index
    %c0_38 = arith.constant 0 : index
    %101 = vector.load %arg11[%c0_37, %c0_38] : memref<1x32xf32, #tpu.memory_space<vmem>>, vector<1x32xf32>
    %cst_39 = arith.constant dense<0.000000e+00> : vector<8xf32>
    %102 = vector.multi_reduction <add>, %99, %cst_39 [1] : vector<8x32xf32> to vector<8xf32>
    %103 = vector.shape_cast %102 : vector<8xf32> to vector<8x1xf32>
    %cst_40 = arith.constant 3.200000e+01 : f32
    %104 = vector.broadcast %cst_40 : f32 to vector<8x1xf32>
    %105 = arith.divf %103, %104 : vector<8x1xf32>
    %106 = vector.broadcast %105 : vector<8x1xf32> to vector<8x32xf32>
    %107 = arith.subf %99, %106 : vector<8x32xf32>
    %108 = arith.mulf %107, %107 : vector<8x32xf32>
    %cst_41 = arith.constant dense<0.000000e+00> : vector<8xf32>
    %109 = vector.multi_reduction <add>, %108, %cst_41 [1] : vector<8x32xf32> to vector<8xf32>
    %110 = vector.shape_cast %109 : vector<8xf32> to vector<8x1xf32>
    %cst_42 = arith.constant 3.200000e+01 : f32
    %111 = vector.broadcast %cst_42 : f32 to vector<8x1xf32>
    %112 = arith.divf %110, %111 : vector<8x1xf32>
    %113 = vector.broadcast %105 : vector<8x1xf32> to vector<8x32xf32>
    %114 = arith.subf %99, %113 : vector<8x32xf32>
    %cst_43 = arith.constant 9.99999974E-6 : f32
    %115 = vector.broadcast %cst_43 : f32 to vector<8x1xf32>
    %116 = arith.addf %112, %115 : vector<8x1xf32>
    %117 = math.rsqrt %116 : vector<8x1xf32>
    %118 = vector.broadcast %117 : vector<8x1xf32> to vector<8x32xf32>
    %119 = arith.mulf %114, %118 : vector<8x32xf32>
    %120 = vector.broadcast %100 : vector<1x32xf32> to vector<8x32xf32>
    %121 = arith.mulf %119, %120 : vector<8x32xf32>
    %122 = vector.broadcast %101 : vector<1x32xf32> to vector<8x32xf32>
    %123 = arith.addf %121, %122 : vector<8x32xf32>
    %124 = arith.truncf %123 : vector<8x32xf32> to vector<8x32xbf16>
    %c0_44 = arith.constant 0 : index
    %c0_45 = arith.constant 0 : index
    %125 = vector.load %arg12[%c0_44, %c0_45] : memref<32x64xbf16, #tpu.memory_space<vmem>>, vector<32x64xbf16>
    %cst_46 = arith.constant dense<0.000000e+00> : vector<8x64xf32>
    %126 = tpu.matmul %124, %125, %cst_46 {dimension_numbers = #tpu.dot_dimension_numbers<[1], [0], [0], [1], [0, 0, 1, 1], [], []>} : vector<8x32xbf16>, vector<32x64xbf16>, vector<8x64xf32> -> vector<8x64xf32>
    %c0_47 = arith.constant 0 : index
    %c0_48 = arith.constant 0 : index
    %127 = vector.load %arg13[%c0_47, %c0_48] : memref<1x64xf32, #tpu.memory_space<vmem>>, vector<1x64xf32>
    %128 = vector.broadcast %127 : vector<1x64xf32> to vector<8x64xf32>
    %129 = arith.addf %126, %128 : vector<8x64xf32>
    %cst_49 = arith.constant 5.000000e-01 : f32
    %130 = vector.broadcast %cst_49 : f32 to vector<8x64xf32>
    %131 = arith.mulf %130, %129 : vector<8x64xf32>
    %cst_50 = arith.constant 0.707106769 : f32
    %132 = vector.broadcast %cst_50 : f32 to vector<8x64xf32>
    %133 = arith.mulf %129, %132 : vector<8x64xf32>
    %134 = math.erf %133 : vector<8x64xf32>
    %cst_51 = arith.constant 1.000000e+00 : f32
    %135 = vector.broadcast %cst_51 : f32 to vector<8x64xf32>
    %136 = arith.addf %135, %134 : vector<8x64xf32>
    %137 = arith.mulf %131, %136 : vector<8x64xf32>
    %138 = arith.truncf %137 : vector<8x64xf32> to vector<8x64xbf16>
    %c0_52 = arith.constant 0 : index
    %c0_53 = arith.constant 0 : index
    %139 = vector.load %arg14[%c0_52, %c0_53] : memref<64x32xbf16, #tpu.memory_space<vmem>>, vector<64x32xbf16>
    %cst_54 = arith.constant dense<0.000000e+00> : vector<8x32xf32>
    %140 = tpu.matmul %138, %139, %cst_54 {dimension_numbers = #tpu.dot_dimension_numbers<[1], [0], [0], [1], [0, 0, 1, 1], [], []>} : vector<8x64xbf16>, vector<64x32xbf16>, vector<8x32xf32> -> vector<8x32xf32>
    %c0_55 = arith.constant 0 : index
    %c0_56 = arith.constant 0 : index
    %141 = vector.load %arg15[%c0_55, %c0_56] : memref<1x32xf32, #tpu.memory_space<vmem>>, vector<1x32xf32>
    %142 = vector.broadcast %141 : vector<1x32xf32> to vector<8x32xf32>
    %143 = arith.addf %140, %142 : vector<8x32xf32>
    %144 = arith.addf %123, %143 : vector<8x32xf32>
    %c0_57 = arith.constant 0 : index
    %c0_58 = arith.constant 0 : index
    %145 = vector.load %arg16[%c0_57, %c0_58] : memref<1x32xf32, #tpu.memory_space<vmem>>, vector<1x32xf32>
    %c0_59 = arith.constant 0 : index
    %c0_60 = arith.constant 0 : index
    %146 = vector.load %arg17[%c0_59, %c0_60] : memref<1x32xf32, #tpu.memory_space<vmem>>, vector<1x32xf32>
    %cst_61 = arith.constant dense<0.000000e+00> : vector<8xf32>
    %147 = vector.multi_reduction <add>, %144, %cst_61 [1] : vector<8x32xf32> to vector<8xf32>
    %148 = vector.shape_cast %147 : vector<8xf32> to vector<8x1xf32>
    %cst_62 = arith.constant 3.200000e+01 : f32
    %149 = vector.broadcast %cst_62 : f32 to vector<8x1xf32>
    %150 = arith.divf %148, %149 : vector<8x1xf32>
    %151 = vector.broadcast %150 : vector<8x1xf32> to vector<8x32xf32>
    %152 = arith.subf %144, %151 : vector<8x32xf32>
    %153 = arith.mulf %152, %152 : vector<8x32xf32>
    %cst_63 = arith.constant dense<0.000000e+00> : vector<8xf32>
    %154 = vector.multi_reduction <add>, %153, %cst_63 [1] : vector<8x32xf32> to vector<8xf32>
    %155 = vector.shape_cast %154 : vector<8xf32> to vector<8x1xf32>
    %cst_64 = arith.constant 3.200000e+01 : f32
    %156 = vector.broadcast %cst_64 : f32 to vector<8x1xf32>
    %157 = arith.divf %155, %156 : vector<8x1xf32>
    %158 = vector.broadcast %150 : vector<8x1xf32> to vector<8x32xf32>
    %159 = arith.subf %144, %158 : vector<8x32xf32>
    %cst_65 = arith.constant 9.99999974E-6 : f32
    %160 = vector.broadcast %cst_65 : f32 to vector<8x1xf32>
    %161 = arith.addf %157, %160 : vector<8x1xf32>
    %162 = math.rsqrt %161 : vector<8x1xf32>
    %163 = vector.broadcast %162 : vector<8x1xf32> to vector<8x32xf32>
    %164 = arith.mulf %159, %163 : vector<8x32xf32>
    %165 = vector.broadcast %145 : vector<1x32xf32> to vector<8x32xf32>
    %166 = arith.mulf %164, %165 : vector<8x32xf32>
    %167 = vector.broadcast %146 : vector<1x32xf32> to vector<8x32xf32>
    %168 = arith.addf %166, %167 : vector<8x32xf32>
    %c0_66 = arith.constant 0 : index
    %c0_67 = arith.constant 0 : index
    %c0_68 = arith.constant 0 : index
    %169 = vector.load %arg18[%c0_66, %c0_67, %c0_68] : memref<1x8x32xf32, #tpu.memory_space<vmem>>, vector<1x8x32xf32>
    %170 = vector.shape_cast %169 : vector<1x8x32xf32> to vector<8x32xf32>
    %171 = vector.shape_cast %168 : vector<8x32xf32> to vector<1x8x32xf32>
    tpu.vector_store %arg18[%c0_66, %c0_67, %c0_68], %171 {strides = array<i32>} : memref<1x8x32xf32, #tpu.memory_space<vmem>>, vector<1x8x32xf32>,
    return
  }
  func.func @transform_0(%arg0: i32, %arg1: i32) -> (i32, i32, i32) {
    %c0_i32 = arith.constant 0 : i32
    %c0_i32_0 = arith.constant 0 : i32
    return %arg0, %arg1, %c0_i32 : i32, i32, i32
  }
  func.func @transform_1(%arg0: i32, %arg1: i32) -> (i32, i32, i32) {
    %c0_i32 = arith.constant 0 : i32
    %c0_i32_0 = arith.constant 0 : i32
    %c0_i32_1 = arith.constant 0 : i32
    return %arg0, %c0_i32, %c0_i32_0 : i32, i32, i32
  }
  func.func @transform_2(%arg0: i32, %arg1: i32) -> (i32, i32) {
    %c0_i32 = arith.constant 0 : i32
    %c0_i32_0 = arith.constant 0 : i32
    %c0_i32_1 = arith.constant 0 : i32
    return %c0_i32, %c0_i32_0 : i32, i32
  }
  func.func @transform_3(%arg0: i32, %arg1: i32) -> (i32, i32) {
    %c0_i32 = arith.constant 0 : i32
    %c0_i32_0 = arith.constant 0 : i32
    %c0_i32_1 = arith.constant 0 : i32
    return %c0_i32, %c0_i32_0 : i32, i32
  }
  func.func @transform_4(%arg0: i32, %arg1: i32) -> (i32, i32) {
    %c0_i32 = arith.constant 0 : i32
    %c0_i32_0 = arith.constant 0 : i32
    %c0_i32_1 = arith.constant 0 : i32
    return %c0_i32, %c0_i32_0 : i32, i32
  }
  func.func @transform_5(%arg0: i32, %arg1: i32) -> (i32, i32) {
    %c0_i32 = arith.constant 0 : i32
    %c0_i32_0 = arith.constant 0 : i32
    %c0_i32_1 = arith.constant 0 : i32
    return %c0_i32, %c0_i32_0 : i32, i32
  }
  func.func @transform_6(%arg0: i32, %arg1: i32) -> (i32, i32) {
    %c0_i32 = arith.constant 0 : i32
    %c0_i32_0 = arith.constant 0 : i32
    %c0_i32_1 = arith.constant 0 : i32
    return %c0_i32, %c0_i32_0 : i32, i32
  }
  func.func @transform_7(%arg0: i32, %arg1: i32) -> (i32, i32) {
    %c0_i32 = arith.constant 0 : i32
    %c0_i32_0 = arith.constant 0 : i32
    %c0_i32_1 = arith.constant 0 : i32
    return %c0_i32, %c0_i32_0 : i32, i32
  }
  func.func @transform_8(%arg0: i32, %arg1: i32) -> (i32, i32) {
    %c0_i32 = arith.constant 0 : i32
    %c0_i32_0 = arith.constant 0 : i32
    %c0_i32_1 = arith.constant 0 : i32
    return %c0_i32, %c0_i32_0 : i32, i32
  }
  func.func @transform_9(%arg0: i32, %arg1: i32) -> (i32, i32) {
    %c0_i32 = arith.constant 0 : i32
    %c0_i32_0 = arith.constant 0 : i32
    %c0_i32_1 = arith.constant 0 : i32
    return %c0_i32, %c0_i32_0 : i32, i32
  }
  func.func @transform_10(%arg0: i32, %arg1: i32) -> (i32, i32) {
    %c0_i32 = arith.constant 0 : i32
    %c0_i32_0 = arith.constant 0 : i32
    %c0_i32_1 = arith.constant 0 : i32
    return %c0_i32, %c0_i32_0 : i32, i32
  }
  func.func @transform_11(%arg0: i32, %arg1: i32) -> (i32, i32) {
    %c0_i32 = arith.constant 0 : i32
    %c0_i32_0 = arith.constant 0 : i32
    %c0_i32_1 = arith.constant 0 : i32
    return %c0_i32, %c0_i32_0 : i32, i32
  }
  func.func @transform_12(%arg0: i32, %arg1: i32) -> (i32, i32) {
    %c0_i32 = arith.constant 0 : i32
    %c0_i32_0 = arith.constant 0 : i32
    %c0_i32_1 = arith.constant 0 : i32
    return %c0_i32, %c0_i32_0 : i32, i32
  }
  func.func @transform_13(%arg0: i32, %arg1: i32) -> (i32, i32) {
    %c0_i32 = arith.constant 0 : i32
    %c0_i32_0 = arith.constant 0 : i32
    %c0_i32_1 = arith.constant 0 : i32
    return %c0_i32, %c0_i32_0 : i32, i32
  }
  func.func @transform_14(%arg0: i32, %arg1: i32) -> (i32, i32) {
    %c0_i32 = arith.constant 0 : i32
    %c0_i32_0 = arith.constant 0 : i32
    %c0_i32_1 = arith.constant 0 : i32
    return %c0_i32, %c0_i32_0 : i32, i32
  }
  func.func @transform_15(%arg0: i32, %arg1: i32) -> (i32, i32) {
    %c0_i32 = arith.constant 0 : i32
    %c0_i32_0 = arith.constant 0 : i32
    %c0_i32_1 = arith.constant 0 : i32
    return %c0_i32, %c0_i32_0 : i32, i32
  }
  func.func @transform_16(%arg0: i32, %arg1: i32) -> (i32, i32, i32) {
    %c0_i32 = arith.constant 0 : i32
    %c0_i32_0 = arith.constant 0 : i32
    return %arg0, %arg1, %c0_i32 : i32, i32, i32
  }
}

</mosaic_0001>

<bundles_post_ra>
// kernel: tpu_custom_call.1
= control target key start
LH: loop header
LB: loop body
LE: loop exit
PB: predicated region body
PF: predicated region fallthrough
CT: control target
= control target key end

     0   :  { %7 = vsyncpa [#allocation3], 0  ;;  %s690_s0 = inlined_call_operand.hbm [shape: f32[2,8,128], index: 0, kind: input, shape index: {}]   ;;  %s691_s1 = inlined_call_operand.hbm [shape: f32[8,128], index: 1, kind: input, shape index: {}]   ;;  %s692_s2 = inlined_call_operand.hbm [shape: f32[2,8,128], index: 2, kind: output, shape index: {}]  }
   0x1   :  { %9 = vsyncpa [#allocation3 + $0x1], 0 }
   0x2   :  { %10 = vsyncpa [#allocation6], 0 }
   0x3   :  { %11 = vsyncpa [#allocation4], 0 }
   0x4   :  { %13 = vsyncpa [#allocation4 + $0x1], 0  ;;  %s489_s9 = smov 0   ;;  %s491_s10 = smov 0  }
   0x5   :  { %s493_s11 = smov 0   ;;  %s495_s12 = smov 0  }
   0x6 LB: > { %s510_s13 = sadd.s32 4294967295, %s469_s12   ;;  %s270_s14 = sadd.s32 4294967294, %s469_s12   ;;  %s469_s12 = sphi %s495_s12, %s716_s12   ;;  %s465_s11 = sphi %s493_s11, %s715_s11   ;;  %s461_s10 = sphi %s491_s10, %s714_s10   ;;  %s457_s9 = sphi %s489_s9, %s713_s9  }
   0x7   : > { %p39_p0 = scmp.ne.s32.totalorder %s461_s10, %s457_s9  ;;  %p693_p1 = scmp.eq.s32.totalorder %s510_s13, 0 }
   0x8   : > { %p90_p3 = scmp.eq.s32.totalorder %s270_s14, 1  ;;  %p271_p5 = scmp.ge.s32.totalorder %s469_s12, 1 }
   0x9   : > { %p519_p4 = por %p693_p1, %p39_p0  ;;  %p97_p7 = scmp.lt.s32.totalorder %s469_s12, 3 }
   0xa   : > { %p524_p6 = por %p90_p3, %p39_p0  ;;  %s471_s18 = smov [#allocation5]  }
   0xb   : > { %s696_s15 = scalar_select %p519_p4, 1, 0 }
   0xc   : > { %s697_s16 = scalar_select %p524_p6, 1, 0 }
   0xd   : > { %p529_p8 = pnand %p271_p5, %p97_p7  ;;  %s110_s19 = sshll.u32 %s471_s18, 4  ;;  %s111_s19 = int_to_ptr.vmem [resolvable:$true] %s110_s19 }
   0xe   : > { %s537_s20 = sadd.s32 1, %s469_s12   ;;  %s26_s24 = sadd.s32 1, %s465_s11 }
   0xf   : > { %s698_s17 = scalar_select %p529_p8, 1, 0 }
  0x10   : > { %p292_p10 = pneg %p529_p8  ;;  %s23_s22 = ssub.s32 %s469_s12, %s537_s20 }
  0x11   : > { %p547_p12 = scmp.eq.s32.totalorder %s23_s22, 0  ;;  %s341_s27 = scalar_lea.hbm %s691_s1, 128 }
  0x12   : > { %p541_p11 = pnand %p292_p10, %p693_p1  ;;  %p342_p0 = scmp.ne.s32.totalorder %s691_s1, %s341_s27 }
  0x13   : > { %s700_s23 = scalar_select %p547_p12, 1, 0 }
  0x14   : > { %p343_p3 = pneg %p541_p11  ;;  %p348_p10 = scmp.lt.u32.totalorder %s341_s27, %s691_s1 }
  0x16   : > { %p344_p5 = pnand %p343_p3, %p342_p0 }
  0x18   : > { %p345_p7 = pneg %p344_p5 }
  0x1a   : > { %p350_p9 = pnand %p348_p10, %p345_p7 }
  0x1c   : > { %353 = shalt.err (!%p350_p9)
}
  0x1d   : > { %s354_s4 = scalar_lea.vmem %s111_s19, 128  ;;  %p362_p6 = scmp.lt.s32.totalorder %s111_s19, %s111_s19 }
  0x1e   : > { %p355_p1 = scmp.ne.s32.totalorder %s111_s19, %s354_s4  ;;  %p363_p4 = scmp.lt.s32.totalorder %s354_s4, %s354_s4 }
  0x20   : > { %p357_p2 = pnand %p355_p1, %p343_p3  ;;  %p364_p8 = por %p363_p4, %p362_p6 }
  0x22   : > { %p358_p13 = pneg %p357_p2 }
  0x24   : > { %p365_p12 = pnand %p364_p8, %p358_p13 }
  0x26   : > { %368 = shalt.err (!%p365_p12)
}
  0x27   : > { %295 = dma.hbm_to_vmem [thread:$0]  (!%p541_p11), %s691_s1, 128, %s111_s19, [#allocation6]  }
  0x28   : > { %p701_p1 = scmp.ne.s32.totalorder %s700_s23, 0  ;;  %p34_p2 = scmp.eq.s32.totalorder %s469_s12, 0 }
  0x29   : > { %p702_p4 = scmp.ne.s32.totalorder %s465_s11, %s461_s10  ;;  %p703_p6 = scmp.eq.s32.totalorder %s510_s13, 1 }
  0x2a   : > { %s573_s7 = scalar_select %p701_p1, %s465_s11, %s26_s24  }
  0x2b   : > { %p581_p8 = por %p703_p6, %p702_p4  ;;  %p305_p9 = scmp.lt.s32.totalorder %s469_s12, 2 }
  0x2c   : > { %s121_s14 = sand.u32 1, %s465_s11   ;;  %p705_p12 = pmov %p702_p4 }
  0x2d   : > { %s274_s18 = sshll.u32 %s121_s14, 3  ;;  %s275_s21 = sshll.u32 %s469_s12, 7 }
  0x2e   : > { %p35_p13 = por %p34_p2, %p705_p12  ;;  %s594_s19 = scalar_lea.hbm %s690_s0, %s275_s21 }
  0x2f   : > { %s125_s23 = scalar_lea.vmem [#allocation2], %s274_s18  ;;  %s122_s27 = scalar_lea.sflag [#allocation3], %s121_s14 }
  0x30   : > { %s132_s24 = sshll.u32 %s125_s23, 4  ;;  %p596_p11 = pnand %p305_p9, %p35_p13  ;;  %s600_s24 = int_to_ptr.vmem [resolvable:$true] %s132_s24 }
  0x31   : > { %s369_s28 = scalar_lea.hbm %s594_s19, 128  ;;  %s374_s3 = scalar_lea.hbm %s690_s0, 256 }
  0x32   : > { %p370_p0 = scmp.ne.s32.totalorder %s594_s19, %s369_s28  ;;  %p371_p3 = pneg %p596_p11 }
  0x33   : > { %p375_p10 = scmp.lt.u32.totalorder %s594_s19, %s690_s0  ;;  %p376_p1 = scmp.lt.u32.totalorder %s374_s3, %s369_s28 }
  0x34   : > { %p372_p5 = pnand %p371_p3, %p370_p0  ;;  %p378_p4 = scmp.lt.u32.totalorder %s369_s28, %s594_s19 }
  0x35   : > { %p377_p2 = por %p376_p1, %p375_p10 }
  0x36   : > { %p373_p7 = pneg %p372_p5 }
  0x37   : > { %p379_p6 = por %p378_p4, %p377_p2 }
  0x39   : > { %p380_p9 = pnand %p379_p6, %p373_p7 }
  0x3b   : > { %383 = shalt.err (!%p380_p9)
}
  0x3c   : > { %s384_s6 = scalar_lea.vmem %s600_s24, 128  ;;  %s472_s14 = smov [#allocation2]  }
  0x3d   : > { %p385_p12 = scmp.ne.s32.totalorder %s600_s24, %s384_s6  ;;  %s389_s18 = sshll.u32 %s472_s14, 4  ;;  %s390_s18 = int_to_ptr.vmem [resolvable:$false] %s389_s18 }
  0x3e   : > { %s391_s21 = scalar_lea.vmem %s390_s18, 256  ;;  %p392_p5 = scmp.lt.s32.totalorder %s600_s24, %s390_s18 }
  0x3f   : > { %p387_p13 = pnand %p385_p12, %p371_p3  ;;  %p393_p10 = scmp.lt.s32.totalorder %s391_s21, %s384_s6 }
  0x41   : > { %p388_p0 = pneg %p387_p13  ;;  %p394_p1 = por %p393_p10, %p392_p5 }
  0x43   : > { %p395_p2 = pnand %p394_p1, %p388_p0 }
  0x45   : > { %398 = shalt.err (!%p395_p2)
}
  0x46   : > { %299 = dma.hbm_to_vmem [thread:$0]  (!%p596_p11), %s594_s19, 128, %s600_s24, %s122_s27  }
  0x47   : > { %p707_p7 = scmp.ne.s32.totalorder %s698_s17, 0 }
  0x48   : > { %s630_s22 = sand.u32 (!%p707_p7), 1, %s461_s10   ;;  %p708_p3 = scmp.ne.s32.totalorder (!%p707_p7), %s696_s15, 0 }
  0x49   : > { %141 = sbr.rel (%p707_p7) target bundleno = 109 (0x6d), region = 28  ;;  %s277_s25 = sshll.u32 (!%p707_p7), %s630_s22, 3 }
  0x4a   : > { %s144_s23 = scalar_lea.sflag (!%p707_p7), [#allocation3], %s630_s22  ;;  %s147_s28 = scalar_lea.vmem (!%p707_p7), [#allocation2], %s277_s25 }
  0x50   : > { %444 = dma.done.wait (%p708_p3), %s144_s23, 128  }
  0x51   : > { %446 = vsyncadd (%p708_p3), %s144_s23, 4294967168  ;;  %p709_p4 = scmp.eq.s32.totalorder %s510_s13, 0 }
  0x53   : > { %448 = dma.done.wait (%p709_p4), [#allocation6], 128   ;;  %p710_p11 = pmov %p709_p4 }
  0x54   : > { %s171_s17 = scalar_lea.vmem [#allocation7], %s277_s25  ;;  %s281_s24 = sshll.u32 %s510_s13, 7  ;;  %v172_v0 = vld [vmem:[%s147_s28] sm:$0xff]  ;;  %v173_v1 = vld [vmem:[#allocation5] sm:$0xff] }
  0x55   : > { %450 = vsyncadd (%p710_p11), [#allocation6], 4294967168  ;;  %s190_s19 = sshll.u32 %s171_s17, 4  ;;  %v174_v2 = vadd.f32 %v173_v1, %v172_v0  ;;  %s648_s27 = scalar_lea.hbm %s692_s2, %s281_s24  ;;  %s643_s19 = int_to_ptr.vmem [resolvable:$true] %s190_s19 }
  0x56   : > { %s177_s29 = scalar_lea.sflag [#allocation4], %s630_s22  ;;  %s399_s30 = scalar_lea.vmem %s643_s19, 128 }
  0x57   : > { %175 = vst [vmem:[%s171_s17] sm:$0xff] %v174_v2  ;;  %p400_p6 = scmp.ne.s32.totalorder %s643_s19, %s399_s30  ;;  %s473_s13 = smov [#allocation7]  }
  0x58   : > { %s403_s3 = sshll.u32 %s473_s13, 4  ;;  %s404_s3 = int_to_ptr.vmem [resolvable:$false] %s403_s3 }
  0x59   : > { %p401_p9 = pnand %p400_p6, %p581_p8  ;;  %s405_s4 = scalar_lea.vmem %s404_s3, 256 }
  0x5a   : > { %p406_p13 = scmp.lt.s32.totalorder %s643_s19, %s404_s3  ;;  %p407_p0 = scmp.lt.s32.totalorder %s405_s4, %s399_s30 }
  0x5b   : > { %p402_p12 = pneg %p401_p9 }
  0x5c   : > { %p408_p5 = por %p407_p0, %p406_p13 }
  0x5e   : > { %p409_p10 = pnand %p408_p5, %p402_p12 }
  0x60   : > { %412 = shalt.err (!%p409_p10)
}
  0x61   : > { %s413_s5 = scalar_lea.hbm %s648_s27, 128  ;;  %s417_s18 = scalar_lea.hbm %s692_s2, 256 }
  0x62   : > { %p414_p1 = scmp.ne.s32.totalorder %s648_s27, %s413_s5  ;;  %p418_p3 = scmp.lt.u32.totalorder %s648_s27, %s692_s2 }
  0x63   : > { %p419_p4 = scmp.lt.u32.totalorder %s417_s18, %s413_s5  ;;  %p421_p6 = scmp.lt.u32.totalorder %s413_s5, %s648_s27 }
  0x64   : > { %p415_p2 = pnand %p414_p1, %p581_p8 }
  0x65   : > { %p420_p11 = por %p419_p4, %p418_p3 }
  0x66   : > { %p416_p7 = pneg %p415_p2 }
  0x67   : > { %p422_p9 = por %p421_p6, %p420_p11 }
  0x69   : > { %p423_p12 = pnand %p422_p9, %p416_p7 }
  0x6b   : > { %426 = shalt.err (!%p423_p12)
}
  0x6c   : > { %290 = dma.vmem_to_hbm [thread:$0]  (%p581_p8), %s643_s19, 128, %s648_s27, %s177_s29  }
  0x6d PF: > { %s202_s25 = sand.u32 1, %s457_s9   ;;  %p711_p13 = scmp.ne.s32.totalorder %s697_s16, 0 }
  0x6e   : > { %p712_p0 = scmp.ge.s32.totalorder %s469_s12, 2  ;;  %s203_s23 = scalar_lea.sflag [#allocation4], %s202_s25 }
  0x70   : > { %p301_p5 = pnand %p712_p0, %p711_p13 }
  0x72   : > { %452 = dma.done.wait (!%p301_p5), %s203_s23, 128  }
  0x73   : > { %454 = vsyncadd (!%p301_p5), %s203_s23, 4294967168  ;;  %p16_p10 = scmp.ge.s32.totalorder %s537_s20, 4   ;;  %s713_s9 = smov %s461_s10 }
  0x74   : > { %s714_s10 = smov %s465_s11  ;;  %s715_s11 = smov %s573_s7 }
  0x75   : > { %s716_s12 = smov %s537_s20  ;;  %18 = sbr.rel (!%p16_p10) target bundleno = 6 (0x6), region = 77 }
  0x7c   :  { %208 = vsyncpa [#allocation3], 1 }
  0x7d   :  { %210 = vsyncpa [#allocation3 + $0x1], 1 }
  0x7e   :  { %211 = vsyncpa [#allocation6], 1 }
  0x7f   :  { %212 = vsyncpa [#allocation4], 1 }
  0x80   :  { %214 = vsyncpa [#allocation4 + $0x1], 1 }

// kernel: tpu_custom_call.1
= control target key start
LH: loop header
LB: loop body
LE: loop exit
PB: predicated region body
PF: predicated region fallthrough
CT: control target
= control target key end

     0   :  { %s2720_s0 = inlined_call_operand.vmem [shape: f32[2,8,32], index: 0, kind: input, shape index: {}]   ;;  %s2721_s1 = inlined_call_operand.vmem [shape: f32[2,8,32], index: 1, kind: input, shape index: {}]   ;;  %s2722_s2 = inlined_call_operand.vmem [shape: bf16[32,32], index: 2, kind: input, shape index: {}]   ;;  %s2723_s3 = inlined_call_operand.vmem [shape: f32[1,32], index: 3, kind: input, shape index: {}]   ;;  %s2724_s4 = inlined_call_operand.hbm [shape: bf16[32,64], index: 4, kind: input, shape index: {}]   ;;  %s2725_s5 = inlined_call_operand.vmem [shape: f32[1,64], index: 5, kind: input, shape index: {}]   ;;  %s2726_s6 = inlined_call_operand.hbm [shape: bf16[32,32], index: 6, kind: input, shape index: {}]   ;;  %s2727_s7 = inlined_call_operand.hbm [shape: f32[1,32], index: 7, kind: input, shape index: {}]   ;;  %s2728_s8 = inlined_call_operand.hbm [shape: f32[1,32], index: 8, kind: input, shape index: {}]   ;;  %s2729_s9 = inlined_call_operand.hbm [shape: f32[1,32], index: 9, kind: input, shape index: {}]   ;;  %s2730_s10 = inlined_call_operand.vmem [shape: bf16[32,64], index: 10, kind: input, shape index: {}]   ;;  %s2731_s11 = inlined_call_operand.vmem [shape: f32[1,64], index: 11, kind: input, shape index: {}]   ;;  %s2732_s12 = inlined_call_operand.vmem [shape: bf16[64,32], index: 12, kind: input, shape index: {}]   ;;  %s2733_s13 = inlined_call_operand.vmem [shape: f32[1,32], index: 13, kind: input, shape index: {}]   ;;  %s2734_s14 = inlined_call_operand.vmem [shape: f32[1,32], index: 14, kind: input, shape index: {}]   ;;  %s2735_s15 = inlined_call_operand.vmem [shape: f32[1,32], index: 15, kind: input, shape index: {}]   ;;  %s2736_s16 = inlined_call_operand.hbm [shape: f32[2,8,32], index: 16, kind: output, shape index: {}]  }
   0x1   :  { %2754 = sst [smem:[#allocation25_spill]] %s2720_s0 }
   0x2   :  { %2755 = sst [smem:[#allocation26_spill]] %s2734_s14 }
   0x3   :  { %2756 = sst [smem:[#allocation27_spill]] %s2735_s15 }
   0x4   :  { %2757 = sst [smem:[#allocation28_spill]] %s2736_s16 }
   0x5   :  { %21 = vsyncpa [#allocation3], 0 }
   0x6   :  { %22 = vsyncpa [#allocation6], 0 }
   0x7   :  { %23 = vsyncpa [#allocation9], 0 }
   0x8   :  { %24 = vsyncpa [#allocation4], 0 }
   0x9   :  { %26 = vsyncpa [#allocation4 + $0x1], 0  ;;  %s2328_s21 = smov 0   ;;  %s2330_s22 = smov 0  }
   0xa   :  { %s2332_s23 = smov 0   ;;  %s2334_s24 = smov 0  }
   0xb   :  { %s2336_s25 = smov 0   ;;  %s2338_s26 = smov 0  }
   0xc LB: > { %2758 = sst [smem:[#allocation16_spill]] %s2201_s21  ;;  %s1656_s27 = sadd.s32 4294967295, %s2221_s26   ;;  %s2221_s26 = sphi %s2338_s26, %s32_s26   ;;  %s2217_s25 = sphi %s2336_s25, %s2792_s25   ;;  %s2213_s24 = sphi %s2334_s24, %s2791_s24   ;;  %s2209_s23 = sphi %s2332_s23, %s2790_s23   ;;  %s2205_s22 = sphi %s2330_s22, %s2789_s22   ;;  %s2201_s21 = sphi %s2328_s21, %s2788_s21  }
   0xd   : > { %2759 = sst [smem:[#allocation17_spill]] %s2205_s22  ;;  %s1657_s28 = sadd.s32 4294967294, %s2221_s26  }
   0xe   : > { %2760 = sst [smem:[#allocation18_spill]] %s2209_s23  ;;  %s44_s29 = sadd.s32 1, %s2217_s25 }
   0xf   : > { %2761 = sst [smem:[#allocation19_spill]] %s2217_s25  ;;  %s401_s30 = sadd.s32 1, %s2209_s23 }
  0x10   : > { %2762 = sst [smem:[#allocation20_spill]] %s2221_s26  ;;  %p46_p0 = scmp.ge.s32.totalorder %s44_s29, 2 }
  0x11   : > { %p411_p1 = scmp.ne.s32.totalorder %s2209_s23, %s2205_s22  ;;  %p412_p2 = scmp.eq.s32.totalorder %s1656_s27, 1 }
  0x12   : > { %p417_p3 = scmp.ne.s32.totalorder %s2205_s22, %s2201_s21  ;;  %s2794_s29 = smov (%p46_p0, %s44_s29), 0 }
  0x13   : > { %2763 = sst [smem:[#allocation21_spill]] %s2794_s29  ;;  %p2368_p4 = por %p412_p2, %p411_p1 }
  0x14   : > { %p418_p5 = scmp.eq.s32.totalorder %s1657_s28, 1  ;;  %s396_s17 = ssub.s32 %s2217_s25, %s2794_s29 }
  0x15   : > { %s2764_s0 = scalar_select %p2368_p4, 1, 0 }
  0x16   : > { %p1658_p6 = scmp.ge.s32.totalorder %s2221_s26, 1  ;;  %p399_p7 = scmp.eq.s32.totalorder %s396_s17, 0 }
  0x17   : > { %2765 = sst [smem:[#allocation22_spill]] %s2764_s0  ;;  %p2375_p8 = por %p418_p5, %p417_p3 }
  0x18   : > { %p425_p9 = scmp.lt.s32.totalorder %s2221_s26, 3  ;;  %p2387_p11 = scmp.eq.s32.totalorder %s1656_s27, 0 }
  0x19   : > { %s2766_s18 = scalar_select %p2375_p8, 1, 0 }
  0x1a   : > { %s2381_s19 = scalar_select %p399_p7, %s2209_s23, %s401_s30  }
  0x1b   : > { %2767 = sst [smem:[#allocation23_spill]] %s2766_s18  ;;  %p2383_p10 = pnand %p1658_p6, %p425_p9 }
  0x1c   : > { %2768 = sst [smem:[#allocation24_spill]] %s2381_s19  ;;  %s2223_s28 = smov [#allocation5]  }
  0x1d   : > { %s2769_s20 = scalar_select %p2383_p10, 1, 0 }
  0x1e   : > { %s2770_s21 = scalar_select %p2387_p11, 1, 0 }
  0x1f   : > { %p1859_p12 = pneg %p2383_p10  ;;  %s459_s17 = sshll.u32 %s2223_s28, 4  ;;  %s460_s17 = int_to_ptr.vmem [resolvable:$true] %s459_s17 }
  0x20   : > { %s2224_s30 = smov [#allocation8]   ;;  %s1991_s23 = scalar_lea.hbm %s2726_s6, 256 }
  0x21   : > { %p2395_p13 = pnand %p2387_p11, %p1859_p12  ;;  %s484_s25 = sshll.u32 %s2224_s30, 4  ;;  %s2399_s25 = int_to_ptr.vmem [resolvable:$true] %s484_s25 }
  0x22   : > { %p1992_p0 = scmp.ne.s32.totalorder %s2726_s6, %s1991_s23  ;;  %p1998_p5 = scmp.lt.u32.totalorder %s1991_s23, %s2726_s6 }
  0x23   : > { %p2409_p1 = pneg %p2395_p13 }
  0x25   : > { %p1994_p2 = pnand %p2409_p1, %p1992_p0 }
  0x27   : > { %p1995_p3 = pneg %p1994_p2 }
  0x29   : > { %p2000_p6 = pnand %p1998_p5, %p1995_p3 }
  0x2b   : > { %2003 = shalt.err (!%p2000_p6)
}
  0x2c   : > { %s2004_s19 = scalar_lea.vmem %s460_s17, 256  ;;  %p2012_p8 = scmp.lt.s32.totalorder %s460_s17, %s460_s17 }
  0x2d   : > { %p2005_p7 = scmp.ne.s32.totalorder %s460_s17, %s2004_s19  ;;  %p2013_p4 = scmp.lt.s32.totalorder %s2004_s19, %s2004_s19 }
  0x2f   : > { %p2007_p9 = pnand %p2005_p7, %p2409_p1  ;;  %p2014_p11 = por %p2013_p4, %p2012_p8 }
  0x31   : > { %p2008_p12 = pneg %p2007_p9 }
  0x33   : > { %p2015_p10 = pnand %p2014_p11, %p2008_p12 }
  0x35   : > { %2018 = shalt.err (!%p2015_p10)
}
  0x36   : > { %s2752_s26 = smov 64   ;;  %s2753_s18 = smov 4  }
  0x37   : > { %1865 = dma.hbm_to_vmem [thread:$0]  (!%p2395_p13), %s2726_s6, 256, %s460_s17, [#allocation6], %s2752_s26, %s2752_s26, %s2753_s18  }
  0x38   : > { %s2019_s15 = scalar_lea.hbm %s2728_s8, 16 }
  0x39   : > { %p2020_p4 = scmp.ne.s32.totalorder %s2728_s8, %s2019_s15  ;;  %p2026_p11 = scmp.lt.u32.totalorder %s2019_s15, %s2728_s8 }
  0x3b   : > { %p2022_p8 = pnand %p2020_p4, %p2409_p1 }
  0x3d   : > { %p2023_p10 = pneg %p2022_p8 }
  0x3f   : > { %p2028_p0 = pnand %p2026_p11, %p2023_p10 }
  0x41   : > { %2031 = shalt.err (!%p2028_p0)
}
  0x42   : > { %s2032_s17 = scalar_lea.vmem %s2399_s25, 16  ;;  %s2039_s14 = scalar_lea.vmem %s2399_s25, 32 }
  0x43   : > { %p2033_p2 = scmp.ne.s32.totalorder %s2399_s25, %s2032_s17  ;;  %p2040_p6 = scmp.lt.s32.totalorder %s2399_s25, %s2399_s25 }
  0x44   : > { %p2041_p7 = scmp.lt.s32.totalorder %s2039_s14, %s2032_s17 }
  0x45   : > { %p2035_p3 = pnand %p2033_p2, %p2409_p1 }
  0x46   : > { %p2042_p9 = por %p2041_p7, %p2040_p6 }
  0x47   : > { %p2036_p5 = pneg %p2035_p3 }
  0x49   : > { %p2043_p12 = pnand %p2042_p9, %p2036_p5 }
  0x4b   : > { %2046 = shalt.err (!%p2043_p12)
}
  0x4c   : > { %1871 = dma.hbm_to_vmem [thread:$0]  (!%p2395_p13), %s2728_s8, 16, %s2399_s25, [#allocation9]  }
  0x4d   : > { %s2227_s0 = smov [#allocation2]   ;;  %s2228_s23 = smov [#allocation7]  }
  0x4e   : > { %s443_s16 = sshll.u32 %s2227_s0, 4  ;;  %s473_s27 = sshll.u32 %s2228_s23, 4  ;;  %s444_s16 = int_to_ptr.vmem [resolvable:$true] %s443_s16  ;;  %s474_s27 = int_to_ptr.vmem [resolvable:$true] %s473_s27 }
  0x4f   : > { %s2047_s17 = scalar_lea.hbm %s2724_s4, 256 }
  0x50   : > { %p2048_p4 = scmp.ne.s32.totalorder %s2724_s4, %s2047_s17  ;;  %p2054_p11 = scmp.lt.u32.totalorder %s2047_s17, %s2724_s4 }
  0x52   : > { %p2050_p8 = pnand %p2048_p4, %p2409_p1 }
  0x54   : > { %p2051_p10 = pneg %p2050_p8 }
  0x56   : > { %p2056_p0 = pnand %p2054_p11, %p2051_p10 }
  0x58   : > { %2059 = shalt.err (!%p2056_p0)
}
  0x59   : > { %s2060_s25 = scalar_lea.vmem %s444_s16, 256  ;;  %p2068_p6 = scmp.lt.s32.totalorder %s444_s16, %s444_s16 }
  0x5a   : > { %p2061_p2 = scmp.ne.s32.totalorder %s444_s16, %s2060_s25  ;;  %p2069_p7 = scmp.lt.s32.totalorder %s2060_s25, %s2060_s25 }
  0x5c   : > { %p2063_p3 = pnand %p2061_p2, %p2409_p1  ;;  %p2070_p9 = por %p2069_p7, %p2068_p6 }
  0x5e   : > { %p2064_p5 = pneg %p2063_p3 }
  0x60   : > { %p2071_p12 = pnand %p2070_p9, %p2064_p5 }
  0x62   : > { %2074 = shalt.err (!%p2071_p12)
}
  0x63   : > { %s2773_s26 = smov 4   ;;  %s2774_s22 = smov 64  }
  0x64   : > { %1862 = dma.hbm_to_vmem [thread:$0]  (!%p2395_p13), %s2724_s4, 256, %s444_s16, [#allocation3], %s2774_s22, %s2774_s22, %s2773_s26  }
  0x65   : > { %s2075_s19 = scalar_lea.hbm %s2727_s7, 16 }
  0x66   : > { %p2076_p4 = scmp.ne.s32.totalorder %s2727_s7, %s2075_s19  ;;  %p2082_p11 = scmp.lt.u32.totalorder %s2075_s19, %s2727_s7 }
  0x68   : > { %p2078_p8 = pnand %p2076_p4, %p2409_p1 }
  0x6a   : > { %p2079_p10 = pneg %p2078_p8 }
  0x6c   : > { %p2084_p0 = pnand %p2082_p11, %p2079_p10 }
  0x6e   : > { %2087 = shalt.err (!%p2084_p0)
}
  0x6f   : > { %s2088_s18 = scalar_lea.vmem %s474_s27, 16  ;;  %s2095_s16 = scalar_lea.vmem %s474_s27, 32 }
  0x70   : > { %p2089_p2 = scmp.ne.s32.totalorder %s474_s27, %s2088_s18  ;;  %p2096_p6 = scmp.lt.s32.totalorder %s474_s27, %s474_s27 }
  0x71   : > { %p2097_p7 = scmp.lt.s32.totalorder %s2095_s16, %s2088_s18 }
  0x72   : > { %p2091_p3 = pnand %p2089_p2, %p2409_p1 }
  0x73   : > { %p2098_p9 = por %p2097_p7, %p2096_p6 }
  0x74   : > { %p2092_p5 = pneg %p2091_p3 }
  0x76   : > { %p2099_p12 = pnand %p2098_p9, %p2092_p5 }
  0x78   : > { %2102 = shalt.err (!%p2099_p12)
}
  0x79   : > { %1868 = dma.hbm_to_vmem [thread:$0]  (!%p2395_p13), %s2727_s7, 16, %s474_s27, [#allocation6]  }
  0x7a   : > { %s2229_s0 = smov [#allocation10]   ;;  %s2103_s17 = scalar_lea.hbm %s2729_s9, 16 }
  0x7b   : > { %s495_s23 = sshll.u32 %s2229_s0, 4  ;;  %p2104_p4 = scmp.ne.s32.totalorder %s2729_s9, %s2103_s17  ;;  %s496_s23 = int_to_ptr.vmem [resolvable:$true] %s495_s23 }
  0x7c   : > { %p2110_p11 = scmp.lt.u32.totalorder %s2103_s17, %s2729_s9 }
  0x7d   : > { %p2106_p8 = pnand %p2104_p4, %p2409_p1 }
  0x7f   : > { %p2107_p10 = pneg %p2106_p8 }
  0x81   : > { %p2112_p0 = pnand %p2110_p11, %p2107_p10 }
  0x83   : > { %2115 = shalt.err (!%p2112_p0)
}
  0x84   : > { %s2116_s27 = scalar_lea.vmem %s496_s23, 16  ;;  %s2123_s16 = scalar_lea.vmem %s496_s23, 32 }
  0x85   : > { %p2117_p2 = scmp.ne.s32.totalorder %s496_s23, %s2116_s27  ;;  %p2124_p6 = scmp.lt.s32.totalorder %s496_s23, %s496_s23 }
  0x86   : > { %p2125_p7 = scmp.lt.s32.totalorder %s2123_s16, %s2116_s27 }
  0x87   : > { %p2119_p3 = pnand %p2117_p2, %p2409_p1 }
  0x88   : > { %p2126_p9 = por %p2125_p7, %p2124_p6 }
  0x89   : > { %p2120_p5 = pneg %p2119_p3 }
  0x8b   : > { %p2127_p12 = pnand %p2126_p9, %p2120_p5 }
  0x8d   : > { %2130 = shalt.err (!%p2127_p12)
}
  0x8e   : > { %1874 = dma.hbm_to_vmem [thread:$0]  (!%p2395_p13), %s2729_s9, 16, %s496_s23, [#allocation9]  }
  0x8f   : > { %p2775_p4 = scmp.ne.s32.totalorder %s2769_s20, 0 }
  0x90   : > { %p2776_p8 = scmp.ne.s32.totalorder (!%p2775_p4), %s2770_s21, 0 }
  0x91   : > { %543 = sbr.rel (%p2775_p4) target bundleno = 2704 (0xa90), region = 84 }
  0x98   : > { %2184 = dma.done.wait (%p2776_p8), [#allocation3], 256  }
  0x99   : > { %2186 = vsyncadd (%p2776_p8), [#allocation3], 4294967040 }
  0x9a   : > { %2188 = dma.done.wait (%p2776_p8), [#allocation6], 272  }
  0x9b   : > { %2190 = vsyncadd (%p2776_p8), [#allocation6], 4294967024 }
  0x9c   : > { %2192 = dma.done.wait (%p2776_p8), [#allocation9], 32  }
  0x9d   : > { %2194 = vsyncadd (%p2776_p8), [#allocation9], 4294967264  ;;  %p615_p13 = scmp.lt.s32.totalorder %s2213_s24, 1  ;;  %v2230_v0 = vmov 0.0   ;;  %vm2231_vm0 = vmmov 0   ;;  %s2777_s0 = sld [smem:[#allocation25_spill]] }
  0x9e   : > { %1745 = vmatprep.subr.bf16.mxu1 %v2230_v0  ;;  %1749 = vmatprep.mubr.msk.bf16.mxu1 %vm2231_vm0, %v2230_v0  ;;  %v1957_v1 = vld [vmem:[%s2722_s2] sm:$0xff]   ;;  %v1958_v2 = vld [vmem:[%s2722_s2 + $0x8] sm:$0xff]   ;;  %vm654_vm1 = vcmask 261120   ;;  %vm766_vm2 = vcmask 64512   ;;  %s2234_s28 = smov 104   ;;  %s2235_s21 = smov 96  }
  0x9f   : > { %s616_s29 = scalar_select %p615_p13, %s2213_s24, 1  ;;  %1761 = vmatprep.subr.bf16.mxu0 %v2230_v0  ;;  %1763 = vmatprep.mubr.msk.bf16.mxu0 %vm2231_vm0, %v2230_v0  ;;  %v1959_v4 = vld [vmem:[#allocation2] sm:$0xff]   ;;  %v1960_v6 = vld [vmem:[#allocation2 + $0x8] sm:$0xff]   ;;  %vm831_vm3 = vcmask 1043456   ;;  %vm1219_vm4 = vcmask 130048   ;;  %vm1221_vm5 = vcmask 195584  }
  0xa0   : > { %1746 = vmatpush3.bf16.msra.mxu1 %v1957_v1  ;;  %v1678_v13 = vld [vmem:[%s2725_s5] ss:$0 sm:$0xff]  ;;  %s2238_s30 = smov 88   ;;  %s2239_s19 = smov 8   ;;  %vm1433_vm6 = vcmask 523264  }
  0xa1   : > { %s1672_s20 = sshll.u32 %s616_s29, 3  ;;  %1747 = vmatprep.subr.bf16.mxu1 %v2230_v0  ;;  %v1674_v14 = vld [vmem:[%s2723_s3] ss:$0 sm:$0xff]  ;;  %s2232_s29 = smov 112  }
  0xa2   : > { %s625_s18 = scalar_lea.vmem %s2721_s1, %s1672_s20  ;;  %s2240_s17 = smov 16  }
  0xa3   : > { %s621_s23 = scalar_lea.vmem %s2777_s0, %s1672_s20  ;;  %v629_v7 = vld [vmem:[%s625_s18] sm:$0xff]  ;;  %s2233_s20 = smov 120  }
  0xa4   : > { %v2540_v3 = vld [vmem:[%s621_s23] sm:$0xff]  ;;  %1748 = vmatpush3.bf16.msra.mxu1 %v1958_v2  ;;  %v630_v8 = vpack.c.bf16 %v629_v7, %v629_v7  ;;  %s2236_s0 = smov 80   ;;  %s2237_s23 = smov 72  }
  0xa5   : > { %v628_v5 = vpack.c.bf16 %v2540_v3, %v2540_v3  ;;  %1753 = vmatprep.subr.bf16.mxu1 %v2230_v0  ;;  %s2241_s14 = smov 24   ;;  %s2779_s18 = sld [smem:[#allocation22_spill]] }
  0xa6   : > { %s2780_s26 = sld [smem:[#allocation26_spill]] }
  0xa7   : > { %1750 = vmatmul.mubr.msk.bf16.vlgmr.msra.gmra.mrb[0].mxu1 %vm654_vm1, %v628_v5 }
  0xa8   : > { %1754 = vmatpush3.bf16.msra.mxu1 %v1959_v4  ;;  %1757 = vmatprep.mubr.msk.bf16.mxu1 %vm2231_vm0, %v2230_v0 }
  0xa9   : > { %1755 = vmatprep.subr.bf16.mxu1 %v2230_v0 }
  0xab   : > { %p2783_p10 = scmp.ne.s32.totalorder %s2779_s18, 0 }
  0xac   : > { %1756 = vmatpush3.bf16.msra.mxu1 %v1960_v6 }
  0xad   : > { %1767 = vmatprep.subr.bf16.mxu1 %v2230_v0 }
  0xaf   : > { %1758 = vmatmul.mubr.msk.bf16.vlgmr.msra.gmra.mrb[4].mxu1 %vm654_vm1, %v630_v8 }
  0xb0   : > { %1769 = vmatprep.mubr.msk.bf16.mxu1 %vm2231_vm0, %v2230_v0 }
 0x17a   : > { %v692_v9 = vpop.f32.mrb[0].mxu1 }
 0x17b   : > { %v1751_v10 = vpop.f32.mrb[1].mxu1  ;;  %v693_v19 = vadd.f32 %v1674_v14, %v692_v9 }
 0x17c   : > { %v695_v11 = vpop.f32.mrb[2].mxu1 }
 0x17d   : > { %v1752_v12 = vpop.f32.mrb[3].mxu1  ;;  %v764_v23 = vpack.c.bf16 %v693_v19, %v693_v19 }
 0x182   : > { %v758_v15 = vpop.f32.mrb[4].mxu1 }
 0x183   : > { %v759_v16 = vadd.f32 %v1678_v13, %v758_v15  ;;  %v1759_v17 = vpop.f32.mrb[5].mxu1 }
 0x184   : > { %v761_v18 = vpop.f32.mrb[6].mxu1 }
 0x185   : > { %v2563_v20 = vpack.c.bf16 %v759_v16, %v759_v16  ;;  %v1760_v21 = vpop.f32.mrb[7].mxu1 }
 0x187   : > { %988 = vrot.lane.b32.xlu1 %v2563_v20, %s2232_s29  ;;  %878 = vrot.lane.b32.xlu0 %v2563_v20, %s2233_s20  ;;  %v771_v22 = vsel %vm766_vm2, %v2563_v20, 0 }
 0x188   : > { %1762 = vmatpush3.bf16.xpose.msra.mxu0 %v771_v22 }
 0x189   : > { %1773 = vmatprep.subr.bf16.mxu0 %v2230_v0 }
 0x18b   : > { %986 = vrot.lane.b32.xlu1 %v764_v23, %s2232_s29  ;;  %876 = vrot.lane.b32.xlu0 %v764_v23, %s2233_s20  ;;  %s2781_s20 = sld [smem:[#allocation27_spill]] }
 0x18f   : > { %1096 = vrot.lane.b32.xlu1 %v764_v23, %s2234_s28  ;;  %1098 = vrot.lane.b32.xlu0 %v2563_v20, %s2234_s28  ;;  %s1709_s28 = sshll.u32 %s2213_s24, 7  ;;  %s2242_s24 = smov [#allocation11]  }
 0x190   : > { %1764 = vmatmul.mubr.msk.bf16.vlgmr.msra.gmra.mrb[0].mxu0 %vm766_vm2, %v764_v23 }
 0x191   : > { %1775 = vmatprep.mubr.msk.bf16.mxu0 %vm2231_vm0, %v2230_v0 }
 0x1f9   : > { %v879_v24 = vpop.permute.xlu0 %878  ;;  %v989_v26 = vpop.permute.xlu1 %988 }
 0x1fa   : > { %v884_v25 = vsel %vm766_vm2, %v879_v24, 0  ;;  %v994_v28 = vsel %vm766_vm2, %v989_v26, 0 }
 0x1fb   : > { %1774 = vmatpush3.bf16.xpose.msra.mxu0 %v884_v25 }
 0x1fc   : > { %1785 = vmatprep.subr.bf16.mxu0 %v2230_v0 }
 0x1fd   : > { %v877_v27 = vpop.permute.xlu0 %876  ;;  %v987_v30 = vpop.permute.xlu1 %986 }
 0x201   : > { %v1099_v29 = vpop.permute.xlu0 %1098  ;;  %v1097_v32 = vpop.permute.xlu1 %1096 }
 0x202   : > { %1776 = vmatmul.mubr.msk.bf16.vlgmr.msra.gmra.mrb[4].mxu0 %vm766_vm2, %v877_v27  ;;  %v1104_v31 = vsel %vm766_vm2, %v1099_v29, 0 }
 0x203   : > { %1786 = vmatpush3.bf16.xpose.msra.mxu0 %v994_v28  ;;  %1787 = vmatprep.mubr.msk.bf16.mxu0 %vm2231_vm0, %v2230_v0 }
 0x204   : > { %1797 = vmatprep.subr.bf16.mxu0 %v2230_v0 }
 0x20a   : > { %1788 = vmatmul.mubr.msk.bf16.vlgmr.msra.gmra.mrb[8].mxu0 %vm766_vm2, %v987_v30 }
 0x20b   : > { %1798 = vmatpush3.bf16.xpose.msra.mxu0 %v1104_v31  ;;  %1799 = vmatprep.mubr.msk.bf16.mxu0 %vm2231_vm0, %v2230_v0 }
 0x20c   : > { %1809 = vmatprep.subr.bf16.mxu0 %v2230_v0 }
 0x212   : > { %1800 = vmatmul.mubr.msk.bf16.vlgmr.msra.gmra.mrb[12].mxu0 %vm766_vm2, %v1097_v32 }
 0x213   : > { %1813 = vmatprep.mubr.msk.bf16.mxu0 %vm2231_vm0, %v2230_v0 }
 0x263   : > { %v807_v33 = vpop.f32.mrb[0].mxu0 }
 0x264   : > { %v1765_v34 = vpop.f32.mrb[1].mxu0  ;;  %v813_v35 = vsel %vm766_vm2, %v807_v33, -inf }
 0x265   : > { %814 = vmax.xlane.f32.xlu0 %v813_v35  ;;  %v810_v36 = vpop.f32.mrb[2].mxu0 }
 0x266   : > { %v1766_v37 = vpop.f32.mrb[3].mxu0 }
 0x2d5   : > { %v920_v38 = vpop.f32.mrb[4].mxu0 }
 0x2d6   : > { %v1777_v39 = vpop.f32.mrb[5].mxu0  ;;  %v926_v40 = vsel %vm766_vm2, %v920_v38, -inf }
 0x2d7   : > { %927 = vmax.xlane.f32.xlu1 %v926_v40  ;;  %v923_v41 = vpop.f32.mrb[6].mxu0  ;;  %v1961_v39 = vld [vmem:[#allocation5] sm:$0xff]  }
 0x2d8   : > { %v1778_v42 = vpop.f32.mrb[7].mxu0  ;;  %1810 = vmatpush3.bf16.msra.mxu0 %v1961_v39 }
 0x2d9   : > { %1811 = vmatprep.subr.bf16.mxu0 %v2230_v0 }
 0x2dd   : > { %v1030_v43 = vpop.f32.mrb[8].mxu0 }
 0x2de   : > { %v1789_v44 = vpop.f32.mrb[9].mxu0  ;;  %v1036_v45 = vsel %vm766_vm2, %v1030_v43, -inf }
 0x2df   : > { %1037 = vmax.xlane.f32.xlu0 %v1036_v45  ;;  %v1033_v46 = vpop.f32.mrb[10].mxu0  ;;  %v1962_v44 = vld [vmem:[#allocation5 + $0x8] sm:$0xff]  }
 0x2e0   : > { %v1790_v47 = vpop.f32.mrb[11].mxu0  ;;  %1812 = vmatpush3.bf16.msra.mxu0 %v1962_v44 }
 0x2e1   : > { %1825 = vmatprep.subr.bf16.mxu0 %v2230_v0 }
 0x2e5   : > { %v1140_v48 = vpop.f32.mrb[12].mxu0 }
 0x2e6   : > { %v1801_v49 = vpop.f32.mrb[13].mxu0  ;;  %v1146_v50 = vsel %vm766_vm2, %v1140_v48, -inf }
 0x2e7   : > { %1147 = vmax.xlane.f32.xlu0 %v1146_v50  ;;  %v1143_v51 = vpop.f32.mrb[14].mxu0 }
 0x2e8   : > { %v1802_v52 = vpop.f32.mrb[15].mxu0 }
 0x2f2   : > { %v815_v53 = vpop.xlane.xlu0 %814 }
 0x2f3   : > { %v816_v54 = vsub.f32 %v807_v33, %v815_v53 }
 0x2f5   : > { %v817_v55 = vmul.f32 1.442695, %v816_v54 }
 0x2f7   : > { %1969 = vpow2.f32 %v817_v55 }
 0x301   : > { %v1970_v56 = vpop.eup %1969 }
 0x302   : > { %v819_v57 = vsel %vm766_vm2, %v1970_v56, 0.0 }
 0x303   : > { %820 = vadd.xlane.f32.xlu1 %v819_v57 }
 0x314   : > { %826 = vrot.lane.b32.xlu1 %v2563_v20, %s2235_s21 }
 0x364   : > { %v928_v58 = vpop.xlane.xlu1 %927 }
 0x365   : > { %v929_v59 = vsub.f32 %v920_v38, %v928_v58 }
 0x367   : > { %v930_v60 = vmul.f32 1.442695, %v929_v59 }
 0x369   : > { %1971 = vpow2.f32 %v930_v60  ;;  %v1690_v60 = vld [vmem:[#allocation7] ss:$0 sm:$0xff] }
 0x36c   : > { %v1038_v61 = vpop.xlane.xlu0 %1037 }
 0x36d   : > { %v1039_v62 = vsub.f32 %v1030_v43, %v1038_v61 }
 0x36f   : > { %v1040_v63 = vmul.f32 1.442695, %v1039_v62 }
 0x371   : > { %1973 = vpow2.f32 %v1040_v63 }
 0x373   : > { %v1972_v1 = vpop.eup %1971 }
 0x374   : > { %v1148_v2 = vpop.xlane.xlu0 %1147  ;;  %v932_v4 = vsel %vm766_vm2, %v1972_v1, 0.0 }
 0x375   : > { %v1149_v5 = vsub.f32 %v1140_v48, %v1148_v2  ;;  %933 = vadd.xlane.f32.xlu0 %v932_v4 }
 0x377   : > { %v1150_v6 = vmul.f32 1.442695, %v1149_v5 }
 0x379   : > { %1975 = vpow2.f32 %v1150_v6 }
 0x37b   : > { %v1974_v7 = vpop.eup %1973 }
 0x37c   : > { %v1042_v8 = vsel %vm766_vm2, %v1974_v7, 0.0 }
 0x37d   : > { %1043 = vadd.xlane.f32.xlu1 %v1042_v8 }
 0x383   : > { %v1976_v9 = vpop.eup %1975 }
 0x384   : > { %v1152_v10 = vsel %vm766_vm2, %v1976_v9, 0.0 }
 0x385   : > { %1153 = vadd.xlane.f32.xlu0 %v1152_v10 }
 0x38e   : > { %1048 = vrot.lane.b32.xlu1 %v2563_v20, %s2236_s0 }
 0x390   : > { %v821_v11 = vpop.xlane.xlu1 %820 }
 0x391   : > { %1977 = vrcp.f32 %v821_v11  ;;  %v1963_v11 = vld [vmem:[%s2730_s10] sm:$0xff]  }
 0x392   : > { %1158 = vrot.lane.b32.xlu1 %v2563_v20, %s2237_s23 }
 0x394   : > { %v827_v12 = vpop.permute.xlu1 %826 }
 0x395   : > { %v833_v13 = vsel %vm831_vm3, %v827_v12, 0  ;;  %v1964_v12 = vld [vmem:[%s2730_s10 + $0x8] sm:$0xff]  }
 0x396   : > { %1768 = vmatpush3.bf16.msra.mxu1 %v833_v13 }
 0x397   : > { %1779 = vmatprep.subr.bf16.mxu1 %v2230_v0 }
 0x39b   : > { %v1978_v14 = vpop.eup %1977  ;;  %938 = vrot.lane.b32.xlu0 %v2563_v20, %s2238_s30 }
 0x39c   : > { %v823_v15 = vmul.f32 %v1978_v14, %v1970_v56 }
 0x39e   : > { %v824_v16 = vpack.c.bf16 %v823_v15, %v823_v15 }
 0x3a0   : > { %1770 = vmatmul.mubr.msk.bf16.vlgmr.msra.gmra.mrb[8].mxu1 %vm766_vm2, %v824_v16  ;;  %v1694_v16 = vld [vmem:[#allocation8] ss:$0 sm:$0xff] }
 0x3a1   : > { %1781 = vmatprep.mubr.msk.bf16.mxu1 %vm2231_vm0, %v2230_v0 }
 0x402   : > { %v934_v17 = vpop.xlane.xlu0 %933 }
 0x403   : > { %1979 = vrcp.f32 %v934_v17 }
 0x40a   : > { %v1044_v18 = vpop.xlane.xlu1 %1043 }
 0x40b   : > { %1981 = vrcp.f32 %v1044_v18  ;;  %v1695_v18 = vld [vmem:[#allocation10] ss:$0 sm:$0xff] }
 0x40d   : > { %v1980_v19 = vpop.eup %1979 }
 0x40e   : > { %v936_v22 = vmul.f32 %v1980_v19, %v1972_v1  ;;  %v1049_v25 = vpop.permute.xlu1 %1048 }
 0x40f   : > { %v1054_v27 = vsel %vm831_vm3, %v1049_v25, 0  ;;  %v1967_v25 = vld [vmem:[%s2732_s12 + $0x10] sm:$0xff]  }
 0x410   : > { %v937_v20 = vpack.c.bf16 %v936_v22, %v936_v22 }
 0x412   : > { %v1154_v21 = vpop.xlane.xlu0 %1153  ;;  %v1159_v29 = vpop.permute.xlu1 %1158 }
 0x413   : > { %1983 = vrcp.f32 %v1154_v21  ;;  %v1164_v32 = vsel %vm831_vm3, %v1159_v29, 0 }
 0x415   : > { %v1982_v26 = vpop.eup %1981 }
 0x416   : > { %v939_v23 = vpop.permute.xlu0 %938  ;;  %v1046_v28 = vmul.f32 %v1982_v26, %v1974_v7  ;;  %v1696_v26 = vld [vmem:[%s2731_s11] ss:$0 sm:$0xff] }
 0x417   : > { %v944_v24 = vsel %vm831_vm3, %v939_v23, 0  ;;  %v1965_v23 = vld [vmem:[%s2732_s12] sm:$0xff]  }
 0x418   : > { %1780 = vmatpush3.bf16.msra.mxu1 %v944_v24  ;;  %v1047_v30 = vpack.c.bf16 %v1046_v28, %v1046_v28  ;;  %v1966_v24 = vld [vmem:[%s2732_s12 + $0x8] sm:$0xff]  }
 0x419   : > { %1791 = vmatprep.subr.bf16.mxu1 %v2230_v0 }
 0x41b   : > { %1782 = vmatmul.mubr.msk.bf16.vlgmr.msra.gmra.mrb[12].mxu1 %vm766_vm2, %v937_v20  ;;  %v1968_v20 = vld [vmem:[%s2732_s12 + $0x18] sm:$0xff]  }
 0x41c   : > { %1792 = vmatpush3.bf16.msra.mxu1 %v1054_v27  ;;  %1793 = vmatprep.mubr.msk.bf16.mxu1 %vm2231_vm0, %v2230_v0 }
 0x41d   : > { %1803 = vmatprep.subr.bf16.mxu1 %v2230_v0  ;;  %v1984_v31 = vpop.eup %1983 }
 0x41e   : > { %v1156_v33 = vmul.f32 %v1984_v31, %v1976_v9 }
 0x420   : > { %v1157_v34 = vpack.c.bf16 %v1156_v33, %v1156_v33 }
 0x423   : > { %1794 = vmatmul.mubr.msk.bf16.vlgmr.msra.gmra.mrb[16].mxu1 %vm766_vm2, %v1047_v30 }
 0x424   : > { %1804 = vmatpush3.bf16.msra.mxu1 %v1164_v32  ;;  %1805 = vmatprep.mubr.msk.bf16.mxu1 %vm2231_vm0, %v2230_v0 }
 0x425   : > { %1817 = vmatprep.subr.bf16.mxu1 %v2230_v0 }
 0x42b   : > { %1806 = vmatmul.mubr.msk.bf16.vlgmr.msra.gmra.mrb[20].mxu1 %vm766_vm2, %v1157_v34 }
 0x42c   : > { %1821 = vmatprep.mubr.msk.bf16.mxu1 %vm2231_vm0, %v2230_v0  ;;  %1818 = vmatpush3.bf16.msra.mxu1 %v1963_v11 }
 0x42d   : > { %1819 = vmatprep.subr.bf16.mxu1 %v2230_v0 }
 0x430   : > { %1820 = vmatpush3.bf16.msra.mxu1 %v1964_v12 }
 0x473   : > { %v869_v35 = vpop.f32.mrb[8].mxu1 }
 0x474   : > { %v1771_v36 = vpop.f32.mrb[9].mxu1 }
 0x475   : > { %v872_v37 = vpop.f32.mrb[10].mxu1 }
 0x476   : > { %v1772_v38 = vpop.f32.mrb[11].mxu1  ;;  %v1700_v37 = vld [vmem:[%s2733_s13] ss:$0 sm:$0xff] }
 0x4ee   : > { %v980_v40 = vpop.f32.mrb[12].mxu1 }
 0x4ef   : > { %1207 = vrot.lane.b32.xlu0 %v980_v40, %s2239_s19  ;;  %v1783_v41 = vpop.f32.mrb[13].mxu1  ;;  %s2782_s19 = sld [smem:[#allocation28_spill]] }
 0x4f0   : > { %v983_v42 = vpop.f32.mrb[14].mxu1 }
 0x4f1   : > { %v1784_v43 = vpop.f32.mrb[15].mxu1 }
 0x4f6   : > { %v1090_v45 = vpop.f32.mrb[16].mxu1 }
 0x4f7   : > { %1211 = vrot.lane.b32.xlu1 %v1090_v45, %s2240_s17  ;;  %v1795_v46 = vpop.f32.mrb[17].mxu1  ;;  %s2672_s17 = scalar_lea.hbm %s2782_s19, %s1709_s28 }
 0x4f8   : > { %v1093_v47 = vpop.f32.mrb[18].mxu1 }
 0x4f9   : > { %v1796_v48 = vpop.f32.mrb[19].mxu1 }
 0x4fe   : > { %v1200_v49 = vpop.f32.mrb[20].mxu1 }
 0x4ff   : > { %1215 = vrot.lane.b32.xlu0 %v1200_v49, %s2241_s14  ;;  %v1807_v50 = vpop.f32.mrb[21].mxu1  ;;  %s2778_s14 = sld [smem:[#allocation17_spill]] }
 0x500   : > { %v1203_v51 = vpop.f32.mrb[22].mxu1 }
 0x501   : > { %v1808_v52 = vpop.f32.mrb[23].mxu1 }
 0x505   : > { %s612_s15 = sand.u32 1, %s2778_s14  }
 0x506   : > { %s1671_s25 = sshll.u32 %s612_s15, 3  ;;  %s1509_s14 = scalar_lea.sflag [#allocation4], %s612_s15 }
 0x507   : > { %s614_s21 = scalar_lea.vmem [#allocation11], %s1671_s25  ;;  %s2135_s25 = sshll.u32 %s2242_s24, 4  ;;  %s2136_s25 = int_to_ptr.vmem [resolvable:$false] %s2135_s25 }
 0x508   : > { %s1523_s0 = sshll.u32 %s614_s21, 4  ;;  %s2137_s16 = scalar_lea.vmem %s2136_s25, 256  ;;  %s2674_s0 = int_to_ptr.vmem [resolvable:$true] %s1523_s0 }
 0x509   : > { %s2131_s27 = scalar_lea.vmem %s2674_s0, 128  ;;  %p2138_p2 = scmp.lt.s32.totalorder %s2674_s0, %s2136_s25 }
 0x50a   : > { %p2132_p1 = scmp.ne.s32.totalorder %s2674_s0, %s2131_s27  ;;  %p2139_p3 = scmp.lt.s32.totalorder %s2137_s16, %s2131_s27 }
 0x50c   : > { %p2133_p11 = pnand %p2132_p1, %p2783_p10  ;;  %p2140_p5 = por %p2139_p3, %p2138_p2 }
 0x50e   : > { %p2134_p0 = pneg %p2133_p11 }
 0x510   : > { %p2141_p6 = pnand %p2140_p5, %p2134_p0 }
 0x561   : > { %v1208_v53 = vpop.permute.xlu0 %1207 }
 0x562   : > { %v1218_v55 = vsel %vm766_vm2, %v869_v35, %v1208_v53 }
 0x569   : > { %v1212_v54 = vpop.permute.xlu1 %1211 }
 0x56a   : > { %v1220_v56 = vsel %vm1219_vm4, %v1218_v55, %v1212_v54  ;;  %v1706_v54 = vld [vmem:[%s2780_s26] ss:$0 sm:$0xff] }
 0x571   : > { %v1216_v57 = vpop.permute.xlu0 %1215 }
 0x572   : > { %v1222_v58 = vsel %vm1221_vm5, %v1220_v56, %v1216_v57  ;;  %v1707_v56 = vld [vmem:[%s2781_s20] ss:$0 sm:$0xff] }
 0x573   : > { %v1223_v59 = vpack.c.bf16 %v1222_v58, %v1222_v58 }
 0x575   : > { %1814 = vmatmul.mubr.msk.bf16.vlgmr.msra.gmra.mrb[16].mxu0 %vm654_vm1, %v1223_v59 }
 0x576   : > { %1833 = vmatprep.mubr.msk.bf16.mxu0 %vm2231_vm0, %v2230_v0  ;;  %1826 = vmatpush3.bf16.msra.mxu0 %v1965_v23 }
 0x577   : > { %1827 = vmatprep.subr.bf16.mxu0 %v2230_v0 }
 0x57a   : > { %1828 = vmatpush3.bf16.msra.mxu0 %v1966_v24 }
 0x57b   : > { %1829 = vmatprep.subr.bf16.mxu0 %v2230_v0 }
 0x57e   : > { %1830 = vmatpush3.bf16.msra.mxu0 %v1967_v25 }
 0x57f   : > { %1831 = vmatprep.subr.bf16.mxu0 %v2230_v0 }
 0x582   : > { %1832 = vmatpush3.bf16.msra.mxu0 %v1968_v20 }
 0x648   : > { %v1284_v61 = vpop.f32.mrb[16].mxu0 }
 0x649   : > { %v1285_v62 = vadd.f32 %v1690_v60, %v1284_v61  ;;  %v1815_v63 = vpop.f32.mrb[17].mxu0 }
 0x64a   : > { %v1287_v1 = vpop.f32.mrb[18].mxu0 }
 0x64b   : > { %v1816_v2 = vpop.f32.mrb[19].mxu0  ;;  %v1290_v4 = vadd.f32 %v1285_v62, %v2540_v3 }
 0x64d   : > { %v1293_v5 = vsel %vm654_vm1, %v1290_v4, 0.0 }
 0x64e   : > { %1294 = vadd.xlane.f32.xlu1 %v1293_v5 }
 0x6db   : > { %v1295_v6 = vpop.xlane.xlu1 %1294 }
 0x6dc   : > { %v1297_v7 = vmul.f32 0.03125, %v1295_v6 }
 0x6de   : > { %v1298_v8 = vsub.f32 %v1290_v4, %v1297_v7 }
 0x6e0   : > { %v1299_v9 = vmul.f32 %v1298_v8, %v1298_v8 }
 0x6e2   : > { %v1300_v10 = vsel %vm654_vm1, %v1299_v9, 0.0 }
 0x6e3   : > { %1301 = vadd.xlane.f32.xlu0 %v1300_v10 }
 0x770   : > { %v1302_v3 = vpop.xlane.xlu0 %1301 }
 0x771   : > { %v1303_v13 = vmul.f32 0.03125, %v1302_v3 }
 0x773   : > { %v1304_v14 = vadd.f32 1e-05, %v1303_v13 }
 0x775   : > { %1985 = vrsqrt.f32 %v1304_v14 }
 0x77f   : > { %v1986_v15 = vpop.eup %1985 }
 0x780   : > { %v1306_v17 = vmul.f32 %v1986_v15, %v1298_v8 }
 0x782   : > { %v1313_v19 = vmul.f32 %v1694_v16, %v1306_v17 }
 0x784   : > { %v1320_v21 = vadd.f32 %v1695_v18, %v1313_v19 }
 0x786   : > { %v1321_v22 = vpack.c.bf16 %v1320_v21, %v1320_v21 }
 0x788   : > { %1822 = vmatmul.mubr.msk.bf16.vlgmr.msra.gmra.mrb[24].mxu1 %vm654_vm1, %v1321_v22 }
 0x85b   : > { %v1382_v27 = vpop.f32.mrb[24].mxu1 }
 0x85c   : > { %v1383_v28 = vadd.f32 %v1696_v26, %v1382_v27  ;;  %v1823_v29 = vpop.f32.mrb[25].mxu1 }
 0x85d   : > { %v1385_v30 = vpop.f32.mrb[26].mxu1 }
 0x85e   : > { %v1389_v31 = vmul.f32 0.70710677, %v1383_v28  ;;  %v1824_v32 = vpop.f32.mrb[27].mxu1  ;;  %v1388_v34 = vmul.f32 0.5, %v1383_v28 }
 0x860   : > { %1987 = verf.f32 %v1389_v31 }
 0x86a   : > { %v1988_v33 = vpop.eup %1987 }
 0x86b   : > { %v1391_v35 = vadd.f32 1.0, %v1988_v33 }
 0x86d   : > { %v1392_v0 = vmul.f32 %v1391_v35, %v1388_v34 }
 0x86f   : > { %v1393_v36 = vpack.c.bf16 %v1392_v0, %v1392_v0 }
 0x871   : > { %1834 = vmatmul.mubr.msk.bf16.vlgmr.msra.gmra.mrb[20].mxu0 %vm1433_vm6, %v1393_v36 }
 0x944   : > { %v1471_v38 = vpop.f32.mrb[20].mxu0 }
 0x945   : > { %v1472_v39 = vadd.f32 %v1700_v37, %v1471_v38  ;;  %v1835_v40 = vpop.f32.mrb[21].mxu0 }
 0x946   : > { %v1474_v41 = vpop.f32.mrb[22].mxu0 }
 0x947   : > { %v1836_v42 = vpop.f32.mrb[23].mxu0  ;;  %v1477_v43 = vadd.f32 %v1472_v39, %v1320_v21 }
 0x949   : > { %v1480_v44 = vsel %vm654_vm1, %v1477_v43, 0.0 }
 0x94a   : > { %1481 = vadd.xlane.f32.xlu0 %v1480_v44 }
 0x9d7   : > { %v1482_v45 = vpop.xlane.xlu0 %1481 }
 0x9d8   : > { %v1483_v46 = vmul.f32 0.03125, %v1482_v45 }
 0x9da   : > { %v1484_v47 = vsub.f32 %v1477_v43, %v1483_v46 }
 0x9dc   : > { %v1485_v48 = vmul.f32 %v1484_v47, %v1484_v47 }
 0x9de   : > { %v1486_v49 = vsel %vm654_vm1, %v1485_v48, 0.0 }
 0x9df   : > { %1487 = vadd.xlane.f32.xlu1 %v1486_v49 }
 0xa6c   : > { %v1488_v50 = vpop.xlane.xlu1 %1487 }
 0xa6d   : > { %v1489_v51 = vmul.f32 0.03125, %v1488_v50 }
 0xa6f   : > { %v1490_v52 = vadd.f32 1e-05, %v1489_v51 }
 0xa71   : > { %1989 = vrsqrt.f32 %v1490_v52 }
 0xa7b   : > { %v1990_v53 = vpop.eup %1989 }
 0xa7c   : > { %v1492_v55 = vmul.f32 %v1990_v53, %v1484_v47 }
 0xa7e   : > { %v1499_v57 = vmul.f32 %v1706_v54, %v1492_v55 }
 0xa80   : > { %v1506_v58 = vadd.f32 %v1707_v56, %v1499_v57 }
 0xa82   : > { %1507 = vst.msk [vmem:[%s614_s21] sm:$0xff] %vm654_vm1, %v1506_v58 }
 0xa83   : > { %2144 = shalt.err (!%p2141_p6)
}
 0xa84   : > { %s2145_s15 = scalar_lea.hbm %s2672_s17, 128  ;;  %s2149_s29 = scalar_lea.hbm %s2782_s19, 256 }
 0xa85   : > { %p2146_p7 = scmp.ne.s32.totalorder %s2672_s17, %s2145_s15  ;;  %p2150_p4 = scmp.lt.u32.totalorder %s2672_s17, %s2782_s19 }
 0xa86   : > { %p2151_p8 = scmp.lt.u32.totalorder %s2149_s29, %s2145_s15  ;;  %p2153_p1 = scmp.lt.u32.totalorder %s2145_s15, %s2672_s17 }
 0xa87   : > { %p2147_p9 = pnand %p2146_p7, %p2783_p10 }
 0xa88   : > { %p2152_p13 = por %p2151_p8, %p2150_p4 }
 0xa89   : > { %p2148_p12 = pneg %p2147_p9 }
 0xa8a   : > { %p2154_p11 = por %p2153_p1, %p2152_p13 }
 0xa8c   : > { %p2155_p0 = pnand %p2154_p11, %p2148_p12 }
 0xa8e   : > { %2158 = shalt.err (!%p2155_p0)
}
 0xa8f   : > { %1857 = dma.vmem_to_hbm [thread:$0]  (%p2783_p10), %s2674_s0, 128, %s2672_s17, %s1509_s14  }
 0xa90 PF: > { %s2784_s21 = sld [smem:[#allocation20_spill]]  ;;  %s2785_s23 = sld [smem:[#allocation16_spill]] }
 0xa91   : > { %s2786_s30 = sld [smem:[#allocation23_spill]] }
 0xa96   : > { %p1889_p2 = scmp.ge.s32.totalorder %s2784_s21, 2  ;;  %s1535_s27 = sand.u32 1, %s2785_s23  }
 0xa97   : > { %p2787_p3 = scmp.ne.s32.totalorder %s2786_s30, 0  ;;  %s1536_s24 = scalar_lea.sflag [#allocation4], %s1535_s27 }
 0xa99   : > { %p1876_p5 = pnand %p1889_p2, %p2787_p3 }
 0xa9b   : > { %2196 = dma.done.wait (!%p1876_p5), %s1536_s24, 128  }
 0xa9c   : > { %2198 = vsyncadd (!%p1876_p5), %s1536_s24, 4294967168  ;;  %s32_s26 = sadd.s32 1, %s2784_s21   ;;  %s2788_s21 = sld [smem:[#allocation17_spill]] }
 0xa9d   : > { %p29_p6 = scmp.ge.s32.totalorder %s32_s26, 4   ;;  %s2789_s22 = sld [smem:[#allocation18_spill]] }
 0xa9e   : > { %s2790_s23 = sld [smem:[#allocation24_spill]]  ;;  %s2791_s24 = sld [smem:[#allocation19_spill]] }
 0xa9f   : > { %s2792_s25 = sld [smem:[#allocation21_spill]]  ;;  %31 = sbr.rel (!%p29_p6) target bundleno = 12 (0xc), region = 143 }
 0xaa6   :  { %1541 = vsyncpa [#allocation3], 1 }
 0xaa7   :  { %1543 = vsyncpa [#allocation3 + $0x1], 1 }
 0xaa8   :  { %1544 = vsyncpa [#allocation6], 1 }
 0xaa9   :  { %1545 = vsyncpa [#allocation9], 1 }
 0xaaa   :  { %1546 = vsyncpa [#allocation4], 1 }
 0xaab   :  { %1548 = vsyncpa [#allocation4 + $0x1], 1 }

</bundles_post_ra>
